<compile_context>
chip_gen: v6e
topology: v6e:2x2x1
jax: 0.10.0
libtpu: 0.0.40
codegen_flags: <defaults>
</compile_context>

<pallas_src>
import jax
import jax.numpy as jnp
import numpy as np
from jax.experimental import pallas as pl
from jax.experimental.pallas import tpu as pltpu

_LANE = 128
_SUBLANE = 8


def _round_up(x, m):
    return (x + m - 1) // m * m


def _largest_divisor_tile(m_pad8, tm_cap):
    """Largest tile (multiple of 8) that divides m_pad8 and is <= tm_cap."""
    q = m_pad8 // _SUBLANE
    cap_q = max(1, tm_cap // _SUBLANE)
    best = 1
    d = 1
    while d * d <= q:
        if q % d == 0:
            lo, hi = d, q // d
            if lo <= cap_q and lo > best:
                best = lo
            if hi <= cap_q and hi > best:
                best = hi
        d += 1
    return best * _SUBLANE


# ---------------------------------------------------------------------------
# Pallas kernel: out_tile = Xr_tile @ Wr + Xi_tile @ (-Wi)   (MXU hot path)
# ---------------------------------------------------------------------------
def qmeasurement_kernel(xr_ref, xi_ref, wr_ref, wni_ref, o_ref):
    acc = jnp.dot(xr_ref[...], wr_ref[...], preferred_element_type=jnp.float32)
    acc = acc + jnp.dot(xi_ref[...], wni_ref[...],
                        preferred_element_type=jnp.float32)
    o_ref[...] = acc.astype(o_ref.dtype)


def qmeasurement_forward(x_real, x_imag, kernel_param, *, tm_max=2048,
                         use_bf16=False):
    """x_real, x_imag: (B, S, E, E).  kernel_param: (E, E, 2)."""
    B, S, E, _ = x_real.shape
    M = B * S
    K = E * E
    out_dtype = x_real.dtype

    # --- parameter glue (tiny, plain JAX): projectors exactly as PyTorch ---
    rk = kernel_param[:, :, 0][..., None]                                   # (E,E,1)
    ik = kernel_param[:, :, 1][..., None]                                   # (E,E,1)
    proj_real = rk @ jnp.swapaxes(rk, 1, 2) + ik @ jnp.swapaxes(ik, 1, 2)   # (E,E,E)
    proj_imag = ik @ jnp.swapaxes(rk, 1, 2) - rk @ jnp.swapaxes(ik, 1, 2)   # (E,E,E)
    w_real = proj_real.reshape(E, K).T                                      # (K,E)
    w_imag_neg = -proj_imag.reshape(E, K).T                                 # (K,E)

    # Lane-pad output dim (E -> multiple of 128, no more) for unmasked stores.
    E_pad = _round_up(E, _LANE)
    if E_pad != E:
        w_real = jnp.pad(w_real, ((0, 0), (0, E_pad - E)))
        w_imag_neg = jnp.pad(w_imag_neg, ((0, 0), (0, E_pad - E)))

    xr = x_real.reshape(M, K)
    xi = x_imag.reshape(M, K)
    x_dtype = jnp.bfloat16 if use_bf16 else x_real.dtype
    if use_bf16:
        xr = xr.astype(jnp.bfloat16)
        xi = xi.astype(jnp.bfloat16)
        w_real = w_real.astype(jnp.bfloat16)
        w_imag_neg = w_imag_neg.astype(jnp.bfloat16)

    # Pad M only to a multiple of 8 (<= 7 rows) — avoids partial tiles without
    # a full-array HBM copy; usually a no-op.
    M_pad8 = _round_up(M, _SUBLANE)
    if M_pad8 != M:
        xr = jnp.pad(xr, ((0, M_pad8 - M), (0, 0)))
        xi = jnp.pad(xi, ((0, M_pad8 - M), (0, 0)))

    # --- VMEM-aware row-tile selection (generation-aware) ---
    try:
        vmem_cap = pltpu.get_tpu_info().vmem_capacity_bytes
    except Exception:
        vmem_cap = 64 << 20            # conservative: v7x per-TC VMEM
    vmem_budget = vmem_cap * 3 // 4    # headroom for compiler scratch / sems

    x_item = jnp.dtype(x_dtype).itemsize
    o_item = jnp.dtype(out_dtype).itemsize
    w_bytes = 2 * K * E_pad * x_item              # two weights, single-buffered
    x_bytes_per_row = 2 * 2 * K * x_item          # 2 inputs x 2 pipeline buffers
    o_bytes_per_row = 2 * E_pad * o_item          # output double-buffered
    avail = max(vmem_budget - w_bytes, _SUBLANE * (x_bytes_per_row + o_bytes_per_row))
    tm_vmem = max(_SUBLANE,
                  (avail // (x_bytes_per_row + o_bytes_per_row)) // _SUBLANE * _SUBLANE)
    tm_cap = max(_SUBLANE, min(tm_max, tm_vmem, M_pad8))
    tm_eff = _largest_divisor_tile(M_pad8, tm_cap)
    grid = (M_pad8 // tm_eff,)
    # Note: no forced 2-step split for tiny M — only v7x (2 TCs) would benefit;
    # on v5e/v6e the grid is a serial loop and the split just adds overhead.

    vmem_limit = int(vmem_budget)

    # Memory-bound cost hint (streamed X reads dominate).
    cost = pl.CostEstimate(
        flops=4 * M_pad8 * K * E_pad,
        transcendentals=0,
        bytes_accessed=(2 * M_pad8 * K * x_item
                        + 2 * K * E_pad * x_item
                        + M_pad8 * E_pad * o_item),
    )

    def _call(weight_specs):
        return pl.pallas_call(
            qmeasurement_kernel,
            out_shape=jax.ShapeDtypeStruct((M_pad8, E_pad), out_dtype),
            grid_spec=pltpu.PrefetchScalarGridSpec(
                num_scalar_prefetch=0,
                grid=grid,
                in_specs=[
                    pl.BlockSpec((tm_eff, K), lambda i: (i, 0)),   # Xr row tile
                    pl.BlockSpec((tm_eff, K), lambda i: (i, 0)),   # Xi row tile
                ] + weight_specs,
                out_specs=pl.BlockSpec((tm_eff, E_pad), lambda i: (i, 0)),
            ),
            compiler_params=pltpu.CompilerParams(
                dimension_semantics=("parallel",),
                vmem_limit_bytes=vmem_limit,
            ),
            cost_estimate=cost,
        )(xr, xi, w_real, w_imag_neg)

    try:
        # Single-buffer the grid-invariant weights (constant index_map): the
        # second pipeline buffer per weight is pure VMEM waste.
        out = _call([
            pl.BlockSpec((K, E_pad), lambda i: (0, 0), pipeline_mode=pl.Buffered(1)),
            pl.BlockSpec((K, E_pad), lambda i: (0, 0), pipeline_mode=pl.Buffered(1)),
        ])
    except Exception:
        # Fallback: default (double-buffered) weights — still correct.
        out = _call([
            pl.BlockSpec((K, E_pad), lambda i: (0, 0)),
            pl.BlockSpec((K, E_pad), lambda i: (0, 0)),
        ])

    return out[:M, :E].reshape(B, S, E)


# ---------------------------------------------------------------------------
# Pure-JAX reference (mirrors the PyTorch forward)
# ---------------------------------------------------------------------------
def qmeasurement_ref(x_real, x_imag, kernel_param):
    rk = kernel_param[:, :, 0][..., None]
    ik = kernel_param[:, :, 1][..., None]
    proj_real = rk @ jnp.swapaxes(rk, 1, 2) + ik @ jnp.swapaxes(ik, 1, 2)
    proj_imag = ik @ jnp.swapaxes(rk, 1, 2) - rk @ jnp.swapaxes(ik, 1, 2)
    return (jnp.einsum('bsjk,ijk->bsi', x_real, proj_real)
            - jnp.einsum('bsjk,ijk->bsi', x_imag, proj_imag))


if __name__ == "__main__":
    B, S, E = 2, 8, 32   # batch=2, seq=8, embed_dim=32  ->  input (B,S,E,E)

    key = jax.random.PRNGKey(0)
    k1, k2, k3 = jax.random.split(key, 3)
    x_real = jax.random.normal(k1, (B, S, E, E), dtype=jnp.float32)
    x_imag = jax.random.normal(k2, (B, S, E, E), dtype=jnp.float32)

    # Test 1: the exact PyTorch __init__ parameter (eye, zeros).
    kernel_param = jnp.stack(
        [jnp.eye(E, dtype=jnp.float32), jnp.zeros((E, E), dtype=jnp.float32)],
        axis=-1)                                               # (E, E, 2)
    out = jax.block_until_ready(qmeasurement_forward(x_real, x_imag, kernel_param))
    ref = qmeasurement_ref(x_real, x_imag, kernel_param)
    np.testing.assert_allclose(np.asarray(out), np.asarray(ref),
                               rtol=1e-4, atol=1e-4)

    # Test 2: random kernel parameter so the imaginary projector branch (and
    # its sign) is numerically exercised, not just multiplied by zero.
    kernel_param_rand = jax.random.normal(k3, (E, E, 2), dtype=jnp.float32)
    out2 = jax.block_until_ready(
        qmeasurement_forward(x_real, x_imag, kernel_param_rand))
    ref2 = qmeasurement_ref(x_real, x_imag, kernel_param_rand)
    np.testing.assert_allclose(np.asarray(out2), np.asarray(ref2),
                               rtol=2e-4, atol=2e-3)

    print("KERNEL_OK")
</pallas_src>

<mosaic_0001>
module attributes {stable_mosaic.version = 11 : i64} {
  func.func @qmeasurement_kernel(%arg0: i32, %arg1: memref<16x1024xf32, #tpu.memory_space<vmem>>, %arg2: memref<16x1024xf32, #tpu.memory_space<vmem>>, %arg3: memref<1024x128xf32, #tpu.memory_space<vmem>>, %arg4: memref<1024x128xf32, #tpu.memory_space<vmem>>, %arg5: memref<16x128xf32, #tpu.memory_space<vmem>>) attributes {dimension_semantics = [#tpu.dimension_semantics<parallel>], iteration_bounds = array<i64: 1>, scalar_prefetch = 0 : i64, scratch_operands = 0 : i64, tpu.core_type = #tpu.core_type<tc>, window_params = [{transform_indices = @transform_0, window_bounds = array<i64: 16, 1024>}, {transform_indices = @transform_1, window_bounds = array<i64: 16, 1024>}, {pipeline_mode = #tpu.pipeline_mode<synchronous>, transform_indices = @transform_2, window_bounds = array<i64: 1024, 128>}, {pipeline_mode = #tpu.pipeline_mode<synchronous>, transform_indices = @transform_3, window_bounds = array<i64: 1024, 128>}, {transform_indices = @transform_4, window_bounds = array<i64: 16, 128>}]} {
    %c0 = arith.constant 0 : index
    %c0_0 = arith.constant 0 : index
    %0 = vector.load %arg1[%c0, %c0_0] : memref<16x1024xf32, #tpu.memory_space<vmem>>, vector<16x1024xf32>
    %c0_1 = arith.constant 0 : index
    %c0_2 = arith.constant 0 : index
    %1 = vector.load %arg3[%c0_1, %c0_2] : memref<1024x128xf32, #tpu.memory_space<vmem>>, vector<1024x128xf32>
    %cst = arith.constant dense<0.000000e+00> : vector<16x128xf32>
    %2 = tpu.matmul %0, %1, %cst {dimension_numbers = #tpu.dot_dimension_numbers<[1], [0], [0], [1], [0, 0, 1, 1], [], []>} : vector<16x1024xf32>, vector<1024x128xf32>, vector<16x128xf32> -> vector<16x128xf32>
    %c0_3 = arith.constant 0 : index
    %c0_4 = arith.constant 0 : index
    %3 = vector.load %arg2[%c0_3, %c0_4] : memref<16x1024xf32, #tpu.memory_space<vmem>>, vector<16x1024xf32>
    %c0_5 = arith.constant 0 : index
    %c0_6 = arith.constant 0 : index
    %4 = vector.load %arg4[%c0_5, %c0_6] : memref<1024x128xf32, #tpu.memory_space<vmem>>, vector<1024x128xf32>
    %cst_7 = arith.constant dense<0.000000e+00> : vector<16x128xf32>
    %5 = tpu.matmul %3, %4, %cst_7 {dimension_numbers = #tpu.dot_dimension_numbers<[1], [0], [0], [1], [0, 0, 1, 1], [], []>} : vector<16x1024xf32>, vector<1024x128xf32>, vector<16x128xf32> -> vector<16x128xf32>
    %6 = arith.addf %2, %5 : vector<16x128xf32>
    %c0_8 = arith.constant 0 : index
    %c0_9 = arith.constant 0 : index
    %7 = vector.load %arg5[%c0_8, %c0_9] : memref<16x128xf32, #tpu.memory_space<vmem>>, vector<16x128xf32>
    tpu.vector_store %arg5[%c0_8, %c0_9], %6 {strides = array<i32>} : memref<16x128xf32, #tpu.memory_space<vmem>>, vector<16x128xf32>,
    return
  }
  func.func @transform_0(%arg0: i32) -> (i32, i32) {
    %c0_i32 = arith.constant 0 : i32
    %c0_i32_0 = arith.constant 0 : i32
    return %arg0, %c0_i32 : i32, i32
  }
  func.func @transform_1(%arg0: i32) -> (i32, i32) {
    %c0_i32 = arith.constant 0 : i32
    %c0_i32_0 = arith.constant 0 : i32
    return %arg0, %c0_i32 : i32, i32
  }
  func.func @transform_2(%arg0: i32) -> (i32, i32) {
    %c0_i32 = arith.constant 0 : i32
    %c0_i32_0 = arith.constant 0 : i32
    %c0_i32_1 = arith.constant 0 : i32
    return %c0_i32, %c0_i32_0 : i32, i32
  }
  func.func @transform_3(%arg0: i32) -> (i32, i32) {
    %c0_i32 = arith.constant 0 : i32
    %c0_i32_0 = arith.constant 0 : i32
    %c0_i32_1 = arith.constant 0 : i32
    return %c0_i32, %c0_i32_0 : i32, i32
  }
  func.func @transform_4(%arg0: i32) -> (i32, i32) {
    %c0_i32 = arith.constant 0 : i32
    %c0_i32_0 = arith.constant 0 : i32
    return %arg0, %c0_i32 : i32, i32
  }
}

module attributes {stable_mosaic.version = 11 : i64} {
  func.func @qmeasurement_kernel(%arg0: i32, %arg1: memref<16x1024xf32, #tpu.memory_space<vmem>>, %arg2: memref<16x1024xf32, #tpu.memory_space<vmem>>, %arg3: memref<1024x128xf32, #tpu.memory_space<vmem>>, %arg4: memref<1024x128xf32, #tpu.memory_space<vmem>>, %arg5: memref<16x128xf32, #tpu.memory_space<vmem>>) attributes {dimension_semantics = [#tpu.dimension_semantics<parallel>], iteration_bounds = array<i64: 1>, scalar_prefetch = 0 : i64, scratch_operands = 0 : i64, tpu.core_type = #tpu.core_type<tc>, window_params = [{transform_indices = @transform_0, window_bounds = array<i64: 16, 1024>}, {transform_indices = @transform_1, window_bounds = array<i64: 16, 1024>}, {pipeline_mode = #tpu.pipeline_mode<synchronous>, transform_indices = @transform_2, window_bounds = array<i64: 1024, 128>}, {pipeline_mode = #tpu.pipeline_mode<synchronous>, transform_indices = @transform_3, window_bounds = array<i64: 1024, 128>}, {transform_indices = @transform_4, window_bounds = array<i64: 16, 128>}]} {
    %c0 = arith.constant 0 : index
    %c0_0 = arith.constant 0 : index
    %0 = vector.load %arg1[%c0, %c0_0] : memref<16x1024xf32, #tpu.memory_space<vmem>>, vector<16x1024xf32>
    %c0_1 = arith.constant 0 : index
    %c0_2 = arith.constant 0 : index
    %1 = vector.load %arg3[%c0_1, %c0_2] : memref<1024x128xf32, #tpu.memory_space<vmem>>, vector<1024x128xf32>
    %cst = arith.constant dense<0.000000e+00> : vector<16x128xf32>
    %2 = tpu.matmul %0, %1, %cst {dimension_numbers = #tpu.dot_dimension_numbers<[1], [0], [0], [1], [0, 0, 1, 1], [], []>} : vector<16x1024xf32>, vector<1024x128xf32>, vector<16x128xf32> -> vector<16x128xf32>
    %c0_3 = arith.constant 0 : index
    %c0_4 = arith.constant 0 : index
    %3 = vector.load %arg2[%c0_3, %c0_4] : memref<16x1024xf32, #tpu.memory_space<vmem>>, vector<16x1024xf32>
    %c0_5 = arith.constant 0 : index
    %c0_6 = arith.constant 0 : index
    %4 = vector.load %arg4[%c0_5, %c0_6] : memref<1024x128xf32, #tpu.memory_space<vmem>>, vector<1024x128xf32>
    %cst_7 = arith.constant dense<0.000000e+00> : vector<16x128xf32>
    %5 = tpu.matmul %3, %4, %cst_7 {dimension_numbers = #tpu.dot_dimension_numbers<[1], [0], [0], [1], [0, 0, 1, 1], [], []>} : vector<16x1024xf32>, vector<1024x128xf32>, vector<16x128xf32> -> vector<16x128xf32>
    %6 = arith.addf %2, %5 : vector<16x128xf32>
    %c0_8 = arith.constant 0 : index
    %c0_9 = arith.constant 0 : index
    %7 = vector.load %arg5[%c0_8, %c0_9] : memref<16x128xf32, #tpu.memory_space<vmem>>, vector<16x128xf32>
    tpu.vector_store %arg5[%c0_8, %c0_9], %6 {strides = array<i32>} : memref<16x128xf32, #tpu.memory_space<vmem>>, vector<16x128xf32>,
    return
  }
  func.func @transform_0(%arg0: i32) -> (i32, i32) {
    %c0_i32 = arith.constant 0 : i32
    %c0_i32_0 = arith.constant 0 : i32
    return %arg0, %c0_i32 : i32, i32
  }
  func.func @transform_1(%arg0: i32) -> (i32, i32) {
    %c0_i32 = arith.constant 0 : i32
    %c0_i32_0 = arith.constant 0 : i32
    return %arg0, %c0_i32 : i32, i32
  }
  func.func @transform_2(%arg0: i32) -> (i32, i32) {
    %c0_i32 = arith.constant 0 : i32
    %c0_i32_0 = arith.constant 0 : i32
    %c0_i32_1 = arith.constant 0 : i32
    return %c0_i32, %c0_i32_0 : i32, i32
  }
  func.func @transform_3(%arg0: i32) -> (i32, i32) {
    %c0_i32 = arith.constant 0 : i32
    %c0_i32_0 = arith.constant 0 : i32
    %c0_i32_1 = arith.constant 0 : i32
    return %c0_i32, %c0_i32_0 : i32, i32
  }
  func.func @transform_4(%arg0: i32) -> (i32, i32) {
    %c0_i32 = arith.constant 0 : i32
    %c0_i32_0 = arith.constant 0 : i32
    return %arg0, %c0_i32 : i32, i32
  }
}

</mosaic_0001>

<bundles_post_ra>
// kernel: tpu_custom_call.1
= control target key start
LH: loop header
LB: loop body
LE: loop exit
PB: predicated region body
PF: predicated region fallthrough
CT: control target
= control target key end

     0   :  { %9 = vsyncpa [#allocation3], 0  ;;  %s1461_s0 = inlined_call_operand.hbm [shape: f32[16,1024], index: 0, kind: input, shape index: {}]   ;;  %s1462_s1 = inlined_call_operand.hbm [shape: f32[16,1024], index: 1, kind: input, shape index: {}]   ;;  %s1463_s2 = inlined_call_operand.hbm [shape: f32[1024,128], index: 2, kind: input, shape index: {}]   ;;  %s1464_s3 = inlined_call_operand.hbm [shape: f32[1024,128], index: 3, kind: input, shape index: {}]   ;;  %s1465_s4 = inlined_call_operand.hbm [shape: f32[16,128], index: 4, kind: output, shape index: {}]  }
   0x1   :  { %10 = vsyncpa [#allocation6], 0 }
   0x2   :  { %11 = vsyncpa [#allocation9], 0 }
   0x3   :  { %12 = vsyncpa [#allocation4], 0  ;;  %s1403_s15 = smov [#allocation5]   ;;  %s1404_s17 = smov [#allocation2]  }
   0x4   :  { %s30_s16 = sshll.u32 %s1403_s15, 4  ;;  %s18_s18 = sshll.u32 %s1404_s17, 4  ;;  %s31_s16 = int_to_ptr.vmem [resolvable:$true] %s30_s16  ;;  %s19_s18 = int_to_ptr.vmem [resolvable:$true] %s18_s18 }
   0x5   :  { %s1303_s19 = scalar_lea.vmem %s31_s16, 2048  ;;  %p1308_p1 = scmp.lt.s32.totalorder %s31_s16, %s31_s16 }
   0x6   :  { %p1304_p0 = scmp.ne.s32.totalorder %s31_s16, %s1303_s19  ;;  %p1309_p2 = scmp.lt.s32.totalorder %s1303_s19, %s1303_s19 }
   0x8   :  { %p1310_p3 = por %p1309_p2, %p1308_p1 }
   0xa   :  { %p1311_p4 = pnand %p1310_p3, %p1304_p0 }
   0xc   :  { %1314 = shalt.err (!%p1311_p4)
}
   0xd   :  { %s1405_s20 = smov 1024   ;;  %s1406_s21 = smov 64  }
   0xe   :  { %36 = dma.hbm_to_vmem [thread:$0]  %s1462_s1, 2048, %s31_s16, [#allocation6], %s1405_s20, %s1405_s20, %s1406_s21  }
   0xf   :  { %s1323_s24 = scalar_lea.vmem %s19_s18, 2048  ;;  %p1328_p6 = scmp.lt.s32.totalorder %s19_s18, %s19_s18 }
  0x10   :  { %p1324_p5 = scmp.ne.s32.totalorder %s19_s18, %s1323_s24  ;;  %p1329_p7 = scmp.lt.s32.totalorder %s1323_s24, %s1323_s24 }
  0x12   :  { %p1330_p8 = por %p1329_p7, %p1328_p6 }
  0x14   :  { %p1331_p9 = pnand %p1330_p8, %p1324_p5 }
  0x16   :  { %1334 = shalt.err (!%p1331_p9)
}
  0x17   :  { %24 = dma.hbm_to_vmem [thread:$0]  %s1461_s0, 2048, %s19_s18, [#allocation3], %s1405_s20, %s1405_s20, %s1406_s21  }
  0x18   :  { %s1407_s27 = smov [#allocation7]  }
  0x19   :  { %s42_s28 = sshll.u32 %s1407_s27, 4  ;;  %s43_s28 = int_to_ptr.vmem [resolvable:$true] %s42_s28 }
  0x1a   :  { %s1343_s29 = scalar_lea.vmem %s43_s28, 16384  ;;  %p1348_p11 = scmp.lt.s32.totalorder %s43_s28, %s43_s28 }
  0x1b   :  { %p1344_p10 = scmp.ne.s32.totalorder %s43_s28, %s1343_s29  ;;  %p1349_p12 = scmp.lt.s32.totalorder %s1343_s29, %s1343_s29 }
  0x1d   :  { %p1350_p13 = por %p1349_p12, %p1348_p11 }
  0x1f   :  { %p1351_p0 = pnand %p1350_p13, %p1344_p10 }
  0x21   :  { %1354 = shalt.err (!%p1351_p0)
}
  0x22   :  { %s1408_s1 = smov 128   ;;  %s1409_s30 = smov 8  }
  0x23   :  { %48 = dma.hbm_to_vmem [thread:$0]  %s1463_s2, 16384, %s43_s28, [#allocation6], %s1408_s1, %s1408_s1, %s1409_s30  }
  0x24   :  { %s1410_s0 = smov [#allocation8]  }
  0x25   :  { %s54_s7 = sshll.u32 %s1410_s0, 4  ;;  %s55_s7 = int_to_ptr.vmem [resolvable:$true] %s54_s7 }
  0x26   :  { %s1363_s8 = scalar_lea.vmem %s55_s7, 16384  ;;  %p1368_p2 = scmp.lt.s32.totalorder %s55_s7, %s55_s7 }
  0x27   :  { %p1364_p1 = scmp.ne.s32.totalorder %s55_s7, %s1363_s8  ;;  %p1369_p3 = scmp.lt.s32.totalorder %s1363_s8, %s1363_s8 }
  0x29   :  { %p1370_p4 = por %p1369_p3, %p1368_p2 }
  0x2b   :  { %p1371_p5 = pnand %p1370_p4, %p1364_p1 }
  0x2d   :  { %1374 = shalt.err (!%p1371_p5)
}
  0x2e   :  { %60 = dma.hbm_to_vmem [thread:$0]  %s1464_s3, 16384, %s55_s7, [#allocation9], %s1408_s1, %s1408_s1, %s1409_s30  }
  0x2f   :  { %1395 = dma.done.wait [#allocation3], 2048  }
  0x30   :  { %1396 = vsyncadd [#allocation3], 4294965248 }
  0x31   :  { %1397 = dma.done.wait [#allocation6], 18432  }
  0x32   :  { %1398 = vsyncadd [#allocation6], 4294948864 }
  0x33   :  { %1399 = dma.done.wait [#allocation9], 16384  }
  0x34   :  { %1400 = vsyncadd [#allocation9], 4294950912  ;;  %v264_v0 = vld [vmem:[#allocation8 + $0xf8] sm:$0xff]  ;;  %v263_v4 = vld [vmem:[#allocation8 + $0xf0] sm:$0xff]  ;;  %s1411_s2 = smov [#allocation10]  }
  0x35   :  { %v296_v1 = vld [vmem:[#allocation8 + $0x1f8] sm:$0xff]  ;;  %982 = vmatprep.subr.mxu0 %v264_v0  ;;  %v295_v5 = vld [vmem:[#allocation8 + $0x1f0] sm:$0xff]  ;;  %v262_v8 = vld [vmem:[#allocation8 + $0xe8] sm:$0xff]  ;;  %s968_s3 = sshll.u32 %s1411_s2, 4  ;;  %s969_s3 = int_to_ptr.vmem [resolvable:$true] %s968_s3 }
  0x36   :  { %v248_v2 = vld [vmem:[#allocation8 + $0x78] sm:$0xff]  ;;  %1020 = vmatprep.subr.mxu1 %v296_v1  ;;  %v247_v6 = vld [vmem:[#allocation8 + $0x70] sm:$0xff]  ;;  %v294_v9 = vld [vmem:[#allocation8 + $0x1e8] sm:$0xff]  ;;  %s1375_s11 = scalar_lea.vmem %s969_s3, 256  ;;  %p1380_p7 = scmp.lt.s32.totalorder %s969_s3, %s969_s3 }
  0x37   :  { %v280_v3 = vld [vmem:[#allocation8 + $0x178] sm:$0xff]  ;;  %983 = vmatpush3.msra.mxu0 %v248_v2  ;;  %v279_v7 = vld [vmem:[#allocation8 + $0x170] sm:$0xff]  ;;  %v246_v10 = vld [vmem:[#allocation8 + $0x68] sm:$0xff]  ;;  %p1376_p6 = scmp.ne.s32.totalorder %s969_s3, %s1375_s11  ;;  %p1381_p8 = scmp.lt.s32.totalorder %s1375_s11, %s1375_s11 }
  0x38   :  { %1021 = vmatpush3.msra.mxu1 %v280_v3  ;;  %984 = vmatprep.subr.mxu0 %v263_v4  ;;  %v278_v11 = vld [vmem:[#allocation8 + $0x168] sm:$0xff]  ;;  %v261_v12 = vld [vmem:[#allocation8 + $0xe0] sm:$0xff]  ;;  %v260_v16 = vld [vmem:[#allocation8 + $0xd8] sm:$0xff] }
  0x39   :  { %1022 = vmatprep.subr.mxu1 %v295_v5  ;;  %985 = vmatpush3.msra.mxu0 %v247_v6  ;;  %v293_v13 = vld [vmem:[#allocation8 + $0x1e0] sm:$0xff]  ;;  %v292_v17 = vld [vmem:[#allocation8 + $0x1d8] sm:$0xff]  ;;  %v259_v20 = vld [vmem:[#allocation8 + $0xd0] sm:$0xff]  ;;  %p1382_p9 = por %p1381_p8, %p1380_p7 }
  0x3a   :  { %1023 = vmatpush3.msra.mxu1 %v279_v7  ;;  %986 = vmatprep.subr.mxu0 %v262_v8  ;;  %v245_v14 = vld [vmem:[#allocation8 + $0x60] sm:$0xff]  ;;  %v244_v18 = vld [vmem:[#allocation8 + $0x58] sm:$0xff]  ;;  %v291_v21 = vld [vmem:[#allocation8 + $0x1d0] sm:$0xff] }
  0x3b   :  { %1024 = vmatprep.subr.mxu1 %v294_v9  ;;  %v277_v15 = vld [vmem:[#allocation8 + $0x160] sm:$0xff]  ;;  %987 = vmatpush3.msra.mxu0 %v246_v10  ;;  %v276_v19 = vld [vmem:[#allocation8 + $0x158] sm:$0xff]  ;;  %v243_v22 = vld [vmem:[#allocation8 + $0x50] sm:$0xff]  ;;  %p1383_p10 = pnand %p1382_p9, %p1376_p6 }
  0x3c   :  { %1025 = vmatpush3.msra.mxu1 %v278_v11  ;;  %988 = vmatprep.subr.mxu0 %v261_v12  ;;  %v275_v23 = vld [vmem:[#allocation8 + $0x150] sm:$0xff]  ;;  %v258_v24 = vld [vmem:[#allocation8 + $0xc8] sm:$0xff]  ;;  %v257_v28 = vld [vmem:[#allocation8 + $0xc0] sm:$0xff] }
  0x3d   :  { %1026 = vmatprep.subr.mxu1 %v293_v13  ;;  %989 = vmatpush3.msra.mxu0 %v245_v14  ;;  %v290_v25 = vld [vmem:[#allocation8 + $0x1c8] sm:$0xff]  ;;  %v289_v29 = vld [vmem:[#allocation8 + $0x1c0] sm:$0xff]  ;;  %v256_v32 = vld [vmem:[#allocation8 + $0xb8] sm:$0xff] }
  0x3e   :  { %1027 = vmatpush3.msra.mxu1 %v277_v15  ;;  %990 = vmatprep.subr.mxu0 %v260_v16  ;;  %v242_v26 = vld [vmem:[#allocation8 + $0x48] sm:$0xff]  ;;  %v241_v30 = vld [vmem:[#allocation8 + $0x40] sm:$0xff]  ;;  %v288_v33 = vld [vmem:[#allocation8 + $0x1b8] sm:$0xff] }
  0x3f   :  { %1028 = vmatprep.subr.mxu1 %v292_v17  ;;  %991 = vmatpush3.msra.mxu0 %v244_v18  ;;  %v274_v27 = vld [vmem:[#allocation8 + $0x148] sm:$0xff]  ;;  %v273_v31 = vld [vmem:[#allocation8 + $0x140] sm:$0xff]  ;;  %v240_v34 = vld [vmem:[#allocation8 + $0x38] sm:$0xff] }
  0x40   :  { %1029 = vmatpush3.msra.mxu1 %v276_v19  ;;  %992 = vmatprep.subr.mxu0 %v259_v20  ;;  %v272_v35 = vld [vmem:[#allocation8 + $0x138] sm:$0xff]  ;;  %v255_v36 = vld [vmem:[#allocation8 + $0xb0] sm:$0xff]  ;;  %v254_v40 = vld [vmem:[#allocation8 + $0xa8] sm:$0xff] }
  0x41   :  { %1030 = vmatprep.subr.mxu1 %v291_v21  ;;  %993 = vmatpush3.msra.mxu0 %v243_v22  ;;  %v287_v37 = vld [vmem:[#allocation8 + $0x1b0] sm:$0xff]  ;;  %v286_v41 = vld [vmem:[#allocation8 + $0x1a8] sm:$0xff]  ;;  %v253_v44 = vld [vmem:[#allocation8 + $0xa0] sm:$0xff] }
  0x42   :  { %1031 = vmatpush3.msra.mxu1 %v275_v23  ;;  %994 = vmatprep.subr.mxu0 %v258_v24  ;;  %v239_v38 = vld [vmem:[#allocation8 + $0x30] sm:$0xff]  ;;  %v238_v42 = vld [vmem:[#allocation8 + $0x28] sm:$0xff]  ;;  %v285_v45 = vld [vmem:[#allocation8 + $0x1a0] sm:$0xff] }
  0x43   :  { %1032 = vmatprep.subr.mxu1 %v290_v25  ;;  %995 = vmatpush3.msra.mxu0 %v242_v26  ;;  %v271_v39 = vld [vmem:[#allocation8 + $0x130] sm:$0xff]  ;;  %v270_v43 = vld [vmem:[#allocation8 + $0x128] sm:$0xff]  ;;  %v237_v46 = vld [vmem:[#allocation8 + $0x20] sm:$0xff] }
  0x44   :  { %1033 = vmatpush3.msra.mxu1 %v274_v27  ;;  %996 = vmatprep.subr.mxu0 %v257_v28  ;;  %v269_v47 = vld [vmem:[#allocation8 + $0x120] sm:$0xff]  ;;  %v252_v48 = vld [vmem:[#allocation8 + $0x98] sm:$0xff]  ;;  %v251_v52 = vld [vmem:[#allocation8 + $0x90] sm:$0xff] }
  0x45   :  { %1034 = vmatprep.subr.mxu1 %v289_v29  ;;  %997 = vmatpush3.msra.mxu0 %v241_v30  ;;  %v284_v49 = vld [vmem:[#allocation8 + $0x198] sm:$0xff]  ;;  %v283_v53 = vld [vmem:[#allocation8 + $0x190] sm:$0xff]  ;;  %v250_v56 = vld [vmem:[#allocation8 + $0x88] sm:$0xff] }
  0x46   :  { %1035 = vmatpush3.msra.mxu1 %v273_v31  ;;  %998 = vmatprep.subr.mxu0 %v256_v32  ;;  %v236_v50 = vld [vmem:[#allocation8 + $0x18] sm:$0xff]  ;;  %v235_v54 = vld [vmem:[#allocation8 + $0x10] sm:$0xff]  ;;  %v282_v57 = vld [vmem:[#allocation8 + $0x188] sm:$0xff] }
  0x47   :  { %1036 = vmatprep.subr.mxu1 %v288_v33  ;;  %999 = vmatpush3.msra.mxu0 %v240_v34  ;;  %v268_v51 = vld [vmem:[#allocation8 + $0x118] sm:$0xff]  ;;  %v267_v55 = vld [vmem:[#allocation8 + $0x110] sm:$0xff]  ;;  %v234_v58 = vld [vmem:[#allocation8 + $0x8] sm:$0xff] }
  0x48   :  { %1037 = vmatpush3.msra.mxu1 %v272_v35  ;;  %1000 = vmatprep.subr.mxu0 %v255_v36  ;;  %v266_v59 = vld [vmem:[#allocation8 + $0x108] sm:$0xff]  ;;  %v249_v60 = vld [vmem:[#allocation8 + $0x80] sm:$0xff]  ;;  %v220_v1 = vld [vmem:[#allocation5 + $0x18] sm:$0xff] }
  0x49   :  { %1038 = vmatprep.subr.mxu1 %v287_v37  ;;  %1001 = vmatpush3.msra.mxu0 %v239_v38  ;;  %v281_v61 = vld [vmem:[#allocation8 + $0x180] sm:$0xff]  ;;  %v218_v63 = vld [vmem:[#allocation5 + $0x8] sm:$0xff]  ;;  %v219_v3 = vld [vmem:[#allocation5 + $0x10] sm:$0xff] }
  0x4a   :  { %1039 = vmatpush3.msra.mxu1 %v271_v39  ;;  %1002 = vmatprep.subr.mxu0 %v254_v40  ;;  %v233_v62 = vld [vmem:[#allocation8] sm:$0xff]  ;;  %v328_v4 = vld [vmem:[#allocation8 + $0x2f8] sm:$0xff]  ;;  %v327_v8 = vld [vmem:[#allocation8 + $0x2f0] sm:$0xff] }
  0x4b   :  { %1040 = vmatprep.subr.mxu1 %v286_v41  ;;  %1003 = vmatpush3.msra.mxu0 %v238_v42  ;;  %v265_v0 = vld [vmem:[#allocation8 + $0x100] sm:$0xff]  ;;  %v360_v5 = vld [vmem:[#allocation8 + $0x3f8] sm:$0xff]  ;;  %v359_v9 = vld [vmem:[#allocation8 + $0x3f0] sm:$0xff] }
  0x4c   :  { %1041 = vmatpush3.msra.mxu1 %v270_v43  ;;  %1004 = vmatprep.subr.mxu0 %v253_v44  ;;  %v217_v2 = vld [vmem:[#allocation5] sm:$0xff]  ;;  %v312_v6 = vld [vmem:[#allocation8 + $0x278] sm:$0xff]  ;;  %v311_v10 = vld [vmem:[#allocation8 + $0x270] sm:$0xff] }
  0x4d   :  { %1042 = vmatprep.subr.mxu1 %v285_v45  ;;  %1005 = vmatpush3.msra.mxu0 %v237_v46  ;;  %v344_v7 = vld [vmem:[#allocation8 + $0x378] sm:$0xff]  ;;  %v343_v11 = vld [vmem:[#allocation8 + $0x370] sm:$0xff]  ;;  %v326_v12 = vld [vmem:[#allocation8 + $0x2e8] sm:$0xff] }
  0x4e   :  { %1043 = vmatpush3.msra.mxu1 %v269_v47  ;;  %1006 = vmatprep.subr.mxu0 %v252_v48  ;;  %v358_v13 = vld [vmem:[#allocation8 + $0x3e8] sm:$0xff]  ;;  %v325_v16 = vld [vmem:[#allocation8 + $0x2e0] sm:$0xff]  ;;  %v324_v20 = vld [vmem:[#allocation8 + $0x2d8] sm:$0xff] }
  0x4f   :  { %1044 = vmatprep.subr.mxu1 %v284_v49  ;;  %1007 = vmatpush3.msra.mxu0 %v236_v50  ;;  %v310_v14 = vld [vmem:[#allocation8 + $0x268] sm:$0xff]  ;;  %v357_v17 = vld [vmem:[#allocation8 + $0x3e0] sm:$0xff]  ;;  %v356_v21 = vld [vmem:[#allocation8 + $0x3d8] sm:$0xff] }
  0x50   :  { %1045 = vmatpush3.msra.mxu1 %v268_v51  ;;  %1008 = vmatprep.subr.mxu0 %v251_v52  ;;  %v342_v15 = vld [vmem:[#allocation8 + $0x368] sm:$0xff]  ;;  %v309_v18 = vld [vmem:[#allocation8 + $0x260] sm:$0xff]  ;;  %v308_v22 = vld [vmem:[#allocation8 + $0x258] sm:$0xff] }
  0x51   :  { %1046 = vmatprep.subr.mxu1 %v283_v53  ;;  %1009 = vmatpush3.msra.mxu0 %v235_v54  ;;  %v341_v19 = vld [vmem:[#allocation8 + $0x360] sm:$0xff]  ;;  %v340_v23 = vld [vmem:[#allocation8 + $0x358] sm:$0xff]  ;;  %v323_v24 = vld [vmem:[#allocation8 + $0x2d0] sm:$0xff] }
  0x52   :  { %1047 = vmatpush3.msra.mxu1 %v267_v55  ;;  %1010 = vmatprep.subr.mxu0 %v250_v56  ;;  %v355_v25 = vld [vmem:[#allocation8 + $0x3d0] sm:$0xff]  ;;  %v322_v28 = vld [vmem:[#allocation8 + $0x2c8] sm:$0xff]  ;;  %v321_v32 = vld [vmem:[#allocation8 + $0x2c0] sm:$0xff] }
  0x53   :  { %1048 = vmatprep.subr.mxu1 %v282_v57  ;;  %1011 = vmatpush3.msra.mxu0 %v234_v58  ;;  %v307_v26 = vld [vmem:[#allocation8 + $0x250] sm:$0xff]  ;;  %v354_v29 = vld [vmem:[#allocation8 + $0x3c8] sm:$0xff]  ;;  %v353_v33 = vld [vmem:[#allocation8 + $0x3c0] sm:$0xff] }
  0x54   :  { %1049 = vmatpush3.msra.mxu1 %v266_v59  ;;  %1012 = vmatprep.subr.mxu0 %v249_v60  ;;  %v339_v27 = vld [vmem:[#allocation8 + $0x350] sm:$0xff]  ;;  %v306_v30 = vld [vmem:[#allocation8 + $0x248] sm:$0xff]  ;;  %v305_v34 = vld [vmem:[#allocation8 + $0x240] sm:$0xff] }
  0x55   :  { %1050 = vmatprep.subr.mxu1 %v281_v61  ;;  %1013 = vmatpush3.msra.mxu0 %v233_v62  ;;  %v338_v31 = vld [vmem:[#allocation8 + $0x348] sm:$0xff]  ;;  %v337_v35 = vld [vmem:[#allocation8 + $0x340] sm:$0xff]  ;;  %v320_v36 = vld [vmem:[#allocation8 + $0x2b8] sm:$0xff] }
  0x56   :  { %425 = vmatprep.mubr.f32.mxu0 %v218_v63  ;;  %1051 = vmatpush3.msra.mxu1 %v265_v0  ;;  %v352_v37 = vld [vmem:[#allocation8 + $0x3b8] sm:$0xff]  ;;  %v319_v40 = vld [vmem:[#allocation8 + $0x2b0] sm:$0xff]  ;;  %v318_v44 = vld [vmem:[#allocation8 + $0x2a8] sm:$0xff] }
  0x57   :  { %500 = vmatprep.mubr.f32.mxu1 %v220_v1  ;;  %426 = vmatmul.mubr.f32.vlgmr.msra.gmra.mxu0 %v217_v2  ;;  %v304_v38 = vld [vmem:[#allocation8 + $0x238] sm:$0xff]  ;;  %v351_v41 = vld [vmem:[#allocation8 + $0x3b0] sm:$0xff]  ;;  %v350_v45 = vld [vmem:[#allocation8 + $0x3a8] sm:$0xff] }
  0x58   :  { %501 = vmatmul.mubr.f32.vlgmr.msra.gmra.mxu1 %v219_v3  ;;  %1058 = vmatprep.subr.mxu0 %v328_v4  ;;  %v336_v39 = vld [vmem:[#allocation8 + $0x338] sm:$0xff]  ;;  %v303_v42 = vld [vmem:[#allocation8 + $0x230] sm:$0xff]  ;;  %v302_v46 = vld [vmem:[#allocation8 + $0x228] sm:$0xff] }
  0x59   :  { %1096 = vmatprep.subr.mxu1 %v360_v5  ;;  %1059 = vmatpush3.msra.mxu0 %v312_v6  ;;  %v335_v43 = vld [vmem:[#allocation8 + $0x330] sm:$0xff]  ;;  %v334_v47 = vld [vmem:[#allocation8 + $0x328] sm:$0xff]  ;;  %v317_v48 = vld [vmem:[#allocation8 + $0x2a0] sm:$0xff] }
  0x5a   :  { %1097 = vmatpush3.msra.mxu1 %v344_v7  ;;  %1060 = vmatprep.subr.mxu0 %v327_v8  ;;  %v349_v49 = vld [vmem:[#allocation8 + $0x3a0] sm:$0xff]  ;;  %v316_v52 = vld [vmem:[#allocation8 + $0x298] sm:$0xff]  ;;  %v226_v56 = vld [vmem:[#allocation5 + $0x48] sm:$0xff] }
  0x5b   :  { %1098 = vmatprep.subr.mxu1 %v359_v9  ;;  %1061 = vmatpush3.msra.mxu0 %v311_v10  ;;  %v301_v50 = vld [vmem:[#allocation8 + $0x220] sm:$0xff]  ;;  %v348_v53 = vld [vmem:[#allocation8 + $0x398] sm:$0xff]  ;;  %v315_v58 = vld [vmem:[#allocation8 + $0x290] sm:$0xff] }
  0x5c   :  { %1099 = vmatpush3.msra.mxu1 %v343_v11  ;;  %1062 = vmatprep.subr.mxu0 %v326_v12  ;;  %v333_v51 = vld [vmem:[#allocation8 + $0x320] sm:$0xff]  ;;  %v300_v54 = vld [vmem:[#allocation8 + $0x218] sm:$0xff]  ;;  %v347_v59 = vld [vmem:[#allocation8 + $0x390] sm:$0xff] }
  0x5d   :  { %1100 = vmatprep.subr.mxu1 %v358_v13  ;;  %1063 = vmatpush3.msra.mxu0 %v310_v14  ;;  %v332_v55 = vld [vmem:[#allocation8 + $0x318] sm:$0xff]  ;;  %v225_v60 = vld [vmem:[#allocation5 + $0x40] sm:$0xff]  ;;  %v227_v61 = vld [vmem:[#allocation5 + $0x50] sm:$0xff] }
  0x5e   :  { %1101 = vmatpush3.msra.mxu1 %v342_v15  ;;  %1064 = vmatprep.subr.mxu0 %v325_v16  ;;  %v228_v57 = vld [vmem:[#allocation5 + $0x58] sm:$0xff]  ;;  %v299_v62 = vld [vmem:[#allocation8 + $0x210] sm:$0xff]  ;;  %v314_v0 = vld [vmem:[#allocation8 + $0x288] sm:$0xff] }
  0x5f   :  { %1102 = vmatprep.subr.mxu1 %v357_v17  ;;  %1065 = vmatpush3.msra.mxu0 %v309_v18  ;;  %v331_v63 = vld [vmem:[#allocation8 + $0x310] sm:$0xff]  ;;  %v346_v1 = vld [vmem:[#allocation8 + $0x388] sm:$0xff]  ;;  %v313_v4 = vld [vmem:[#allocation8 + $0x280] sm:$0xff] }
  0x60   :  { %1103 = vmatpush3.msra.mxu1 %v341_v19  ;;  %1066 = vmatprep.subr.mxu0 %v324_v20  ;;  %v298_v2 = vld [vmem:[#allocation8 + $0x208] sm:$0xff]  ;;  %v345_v5 = vld [vmem:[#allocation8 + $0x380] sm:$0xff]  ;;  %v224_v10 = vld [vmem:[#allocation5 + $0x38] sm:$0xff] }
  0x61   :  { %1104 = vmatprep.subr.mxu1 %v356_v21  ;;  %1067 = vmatpush3.msra.mxu0 %v308_v22  ;;  %v330_v3 = vld [vmem:[#allocation8 + $0x308] sm:$0xff]  ;;  %v297_v6 = vld [vmem:[#allocation8 + $0x200] sm:$0xff]  ;;  %v120_v11 = vld [vmem:[#allocation7 + $0xf8] sm:$0xff] }
  0x62   :  { %1105 = vmatpush3.msra.mxu1 %v340_v23  ;;  %1068 = vmatprep.subr.mxu0 %v323_v24  ;;  %v222_v7 = vld [vmem:[#allocation5 + $0x28] sm:$0xff]  ;;  %v329_v8 = vld [vmem:[#allocation8 + $0x300] sm:$0xff]  ;;  %v152_v12 = vld [vmem:[#allocation7 + $0x1f8] sm:$0xff] }
  0x63   :  { %1106 = vmatprep.subr.mxu1 %v355_v25  ;;  %1069 = vmatpush3.msra.mxu0 %v307_v26  ;;  %v221_v9 = vld [vmem:[#allocation5 + $0x20] sm:$0xff]  ;;  %v223_v13 = vld [vmem:[#allocation5 + $0x30] sm:$0xff]  ;;  %v104_v14 = vld [vmem:[#allocation7 + $0x78] sm:$0xff] }
  0x64   :  { %1107 = vmatpush3.msra.mxu1 %v339_v27  ;;  %1070 = vmatprep.subr.mxu0 %v322_v28  ;;  %v136_v15 = vld [vmem:[#allocation7 + $0x178] sm:$0xff]  ;;  %v119_v16 = vld [vmem:[#allocation7 + $0xf0] sm:$0xff]  ;;  %v230_v18 = vld [vmem:[#allocation5 + $0x68] sm:$0xff] }
  0x65   :  { %1108 = vmatprep.subr.mxu1 %v354_v29  ;;  %1071 = vmatpush3.msra.mxu0 %v306_v30  ;;  %v151_v17 = vld [vmem:[#allocation7 + $0x1f0] sm:$0xff]  ;;  %v229_v21 = vld [vmem:[#allocation5 + $0x60] sm:$0xff]  ;;  %v118_v22 = vld [vmem:[#allocation7 + $0xe8] sm:$0xff] }
  0x66   :  { %1109 = vmatpush3.msra.mxu1 %v338_v31  ;;  %1072 = vmatprep.subr.mxu0 %v321_v32  ;;  %v103_v19 = vld [vmem:[#allocation7 + $0x70] sm:$0xff]  ;;  %v150_v23 = vld [vmem:[#allocation7 + $0x1e8] sm:$0xff]  ;;  %v232_v24 = vld [vmem:[#allocation5 + $0x78] sm:$0xff] }
  0x67   :  { %1110 = vmatprep.subr.mxu1 %v353_v33  ;;  %1073 = vmatpush3.msra.mxu0 %v305_v34  ;;  %v135_v20 = vld [vmem:[#allocation7 + $0x170] sm:$0xff]  ;;  %v102_v25 = vld [vmem:[#allocation7 + $0x68] sm:$0xff]  ;;  %v117_v27 = vld [vmem:[#allocation7 + $0xe0] sm:$0xff] }
  0x68   :  { %1111 = vmatpush3.msra.mxu1 %v337_v35  ;;  %1074 = vmatprep.subr.mxu0 %v320_v36  ;;  %v134_v26 = vld [vmem:[#allocation7 + $0x168] sm:$0xff]  ;;  %v231_v28 = vld [vmem:[#allocation5 + $0x70] sm:$0xff]  ;;  %v149_v29 = vld [vmem:[#allocation7 + $0x1e0] sm:$0xff] }
  0x69   :  { %1112 = vmatprep.subr.mxu1 %v352_v37  ;;  %1075 = vmatpush3.msra.mxu0 %v304_v38  ;;  %v101_v30 = vld [vmem:[#allocation7 + $0x60] sm:$0xff]  ;;  %v116_v32 = vld [vmem:[#allocation7 + $0xd8] sm:$0xff]  ;;  %v115_v36 = vld [vmem:[#allocation7 + $0xd0] sm:$0xff] }
  0x6a   :  { %1113 = vmatpush3.msra.mxu1 %v336_v39  ;;  %1076 = vmatprep.subr.mxu0 %v319_v40  ;;  %v133_v31 = vld [vmem:[#allocation7 + $0x160] sm:$0xff]  ;;  %v148_v33 = vld [vmem:[#allocation7 + $0x1d8] sm:$0xff]  ;;  %v147_v37 = vld [vmem:[#allocation7 + $0x1d0] sm:$0xff] }
  0x6b   :  { %1114 = vmatprep.subr.mxu1 %v351_v41  ;;  %1077 = vmatpush3.msra.mxu0 %v303_v42  ;;  %v100_v34 = vld [vmem:[#allocation7 + $0x58] sm:$0xff]  ;;  %v99_v38 = vld [vmem:[#allocation7 + $0x50] sm:$0xff]  ;;  %v114_v40 = vld [vmem:[#allocation7 + $0xc8] sm:$0xff] }
  0x6c   :  { %1115 = vmatpush3.msra.mxu1 %v335_v43  ;;  %1078 = vmatprep.subr.mxu0 %v318_v44  ;;  %v132_v35 = vld [vmem:[#allocation7 + $0x158] sm:$0xff]  ;;  %v131_v39 = vld [vmem:[#allocation7 + $0x150] sm:$0xff]  ;;  %v146_v41 = vld [vmem:[#allocation7 + $0x1c8] sm:$0xff] }
  0x6d   :  { %1116 = vmatprep.subr.mxu1 %v350_v45  ;;  %1079 = vmatpush3.msra.mxu0 %v302_v46  ;;  %v98_v42 = vld [vmem:[#allocation7 + $0x48] sm:$0xff]  ;;  %v113_v44 = vld [vmem:[#allocation7 + $0xc0] sm:$0xff] }
  0x6e   :  { %1117 = vmatpush3.msra.mxu1 %v334_v47  ;;  %1080 = vmatprep.subr.mxu0 %v317_v48  ;;  %v130_v43 = vld [vmem:[#allocation7 + $0x148] sm:$0xff]  ;;  %v145_v45 = vld [vmem:[#allocation7 + $0x1c0] sm:$0xff]  ;;  %v112_v48 = vld [vmem:[#allocation7 + $0xb8] sm:$0xff] }
  0x6f   :  { %1118 = vmatprep.subr.mxu1 %v349_v49  ;;  %1081 = vmatpush3.msra.mxu0 %v301_v50  ;;  %v97_v46 = vld [vmem:[#allocation7 + $0x40] sm:$0xff]  ;;  %v144_v49 = vld [vmem:[#allocation7 + $0x1b8] sm:$0xff] }
  0x70   :  { %1119 = vmatpush3.msra.mxu1 %v333_v51  ;;  %1082 = vmatprep.subr.mxu0 %v316_v52  ;;  %v129_v47 = vld [vmem:[#allocation7 + $0x140] sm:$0xff]  ;;  %v96_v50 = vld [vmem:[#allocation7 + $0x38] sm:$0xff]  ;;  %v111_v52 = vld [vmem:[#allocation7 + $0xb0] sm:$0xff] }
  0x71   :  { %1120 = vmatprep.subr.mxu1 %v348_v53  ;;  %1083 = vmatpush3.msra.mxu0 %v300_v54  ;;  %v128_v51 = vld [vmem:[#allocation7 + $0x138] sm:$0xff]  ;;  %v143_v53 = vld [vmem:[#allocation7 + $0x1b0] sm:$0xff] }
  0x72   :  { %1121 = vmatpush3.msra.mxu1 %v332_v55  ;;  %430 = vmatprep.mubr.f32.mxu0 %v226_v56  ;;  %v95_v54 = vld [vmem:[#allocation7 + $0x30] sm:$0xff]  ;;  %v110_v56 = vld [vmem:[#allocation7 + $0xa8] sm:$0xff] }
  0x73   :  { %505 = vmatprep.mubr.f32.mxu1 %v228_v57  ;;  %1084 = vmatprep.subr.mxu0 %v315_v58  ;;  %v127_v55 = vld [vmem:[#allocation7 + $0x130] sm:$0xff]  ;;  %v142_v57 = vld [vmem:[#allocation7 + $0x1a8] sm:$0xff] }
  0x74   :  { %1122 = vmatprep.subr.mxu1 %v347_v59  ;;  %431 = vmatmul.mubr.f32.gmra.mxu0 %v225_v60  ;;  %v94_v58 = vld [vmem:[#allocation7 + $0x28] sm:$0xff]  ;;  %v109_v60 = vld [vmem:[#allocation7 + $0xa0] sm:$0xff] }
  0x75   :  { %506 = vmatmul.mubr.f32.gmra.mxu1 %v227_v61  ;;  %1085 = vmatpush3.msra.mxu0 %v299_v62  ;;  %v126_v59 = vld [vmem:[#allocation7 + $0x128] sm:$0xff]  ;;  %v141_v61 = vld [vmem:[#allocation7 + $0x1a0] sm:$0xff] }
  0x76   :  { %1123 = vmatpush3.msra.mxu1 %v331_v63  ;;  %1086 = vmatprep.subr.mxu0 %v314_v0  ;;  %v93_v62 = vld [vmem:[#allocation7 + $0x20] sm:$0xff]  ;;  %v108_v0 = vld [vmem:[#allocation7 + $0x98] sm:$0xff] }
  0x77   :  { %1124 = vmatprep.subr.mxu1 %v346_v1  ;;  %1087 = vmatpush3.msra.mxu0 %v298_v2  ;;  %v125_v63 = vld [vmem:[#allocation7 + $0x120] sm:$0xff]  ;;  %v140_v1 = vld [vmem:[#allocation7 + $0x198] sm:$0xff] }
  0x78   :  { %1125 = vmatpush3.msra.mxu1 %v330_v3  ;;  %1088 = vmatprep.subr.mxu0 %v313_v4  ;;  %v92_v2 = vld [vmem:[#allocation7 + $0x18] sm:$0xff]  ;;  %v107_v4 = vld [vmem:[#allocation7 + $0x90] sm:$0xff] }
  0x79   :  { %1126 = vmatprep.subr.mxu1 %v345_v5  ;;  %1089 = vmatpush3.msra.mxu0 %v297_v6  ;;  %v124_v3 = vld [vmem:[#allocation7 + $0x118] sm:$0xff]  ;;  %v139_v5 = vld [vmem:[#allocation7 + $0x190] sm:$0xff] }
  0x7a   :  { %575 = vmatprep.mubr.f32.mxu0 %v222_v7  ;;  %1127 = vmatpush3.msra.mxu1 %v329_v8  ;;  %v91_v6 = vld [vmem:[#allocation7 + $0x10] sm:$0xff]  ;;  %v106_v8 = vld [vmem:[#allocation7 + $0x88] sm:$0xff] }
  0x7b   :  { %576 = vmatmul.mubr.f32.vlgmr.msra.gmra.mxu0 %v221_v9  ;;  %650 = vmatprep.mubr.f32.mxu1 %v224_v10  ;;  %v123_v7 = vld [vmem:[#allocation7 + $0x110] sm:$0xff]  ;;  %v138_v9 = vld [vmem:[#allocation7 + $0x188] sm:$0xff] }
  0x7c   :  { %1134 = vmatprep.subr.mxu0 %v120_v11  ;;  %1172 = vmatprep.subr.mxu1 %v152_v12  ;;  %v90_v10 = vld [vmem:[#allocation7 + $0x8] sm:$0xff]  ;;  %v105_v12 = vld [vmem:[#allocation7 + $0x80] sm:$0xff] }
  0x7d   :  { %651 = vmatmul.mubr.f32.vlgmr.msra.gmra.mxu1 %v223_v13  ;;  %1135 = vmatpush3.msra.mxu0 %v104_v14  ;;  %v122_v11 = vld [vmem:[#allocation7 + $0x108] sm:$0xff]  ;;  %v137_v13 = vld [vmem:[#allocation7 + $0x180] sm:$0xff] }
  0x7e   :  { %1173 = vmatpush3.msra.mxu1 %v136_v15  ;;  %1136 = vmatprep.subr.mxu0 %v119_v16  ;;  %v89_v14 = vld [vmem:[#allocation7] sm:$0xff]  ;;  %v74_v15 = vld [vmem:[#allocation2 + $0x8] sm:$0xff] }
  0x7f   :  { %1174 = vmatprep.subr.mxu1 %v151_v17  ;;  %580 = vmatprep.mubr.f32.mxu0 %v230_v18  ;;  %v121_v16 = vld [vmem:[#allocation7 + $0x100] sm:$0xff]  ;;  %v76_v18 = vld [vmem:[#allocation2 + $0x18] sm:$0xff] }
  0x80   :  { %1137 = vmatpush3.msra.mxu0 %v103_v19  ;;  %1175 = vmatpush3.msra.mxu1 %v135_v20  ;;  %v73_v17 = vld [vmem:[#allocation2] sm:$0xff]  ;;  %v184_v19 = vld [vmem:[#allocation7 + $0x2f8] sm:$0xff] }
  0x81   :  { %581 = vmatmul.mubr.f32.gmra.mxu0 %v229_v21  ;;  %1138 = vmatprep.subr.mxu0 %v118_v22  ;;  %v216_v20 = vld [vmem:[#allocation7 + $0x3f8] sm:$0xff]  ;;  %v75_v21 = vld [vmem:[#allocation2 + $0x10] sm:$0xff] }
  0x82   :  { %1176 = vmatprep.subr.mxu1 %v150_v23  ;;  %655 = vmatprep.mubr.f32.mxu1 %v232_v24  ;;  %v168_v22 = vld [vmem:[#allocation7 + $0x278] sm:$0xff]  ;;  %v183_v24 = vld [vmem:[#allocation7 + $0x2f0] sm:$0xff] }
  0x83   :  { %1139 = vmatpush3.msra.mxu0 %v102_v25  ;;  %1177 = vmatpush3.msra.mxu1 %v134_v26  ;;  %v200_v23 = vld [vmem:[#allocation7 + $0x378] sm:$0xff]  ;;  %v215_v25 = vld [vmem:[#allocation7 + $0x3f0] sm:$0xff]  ;;  %v82_v26 = vld [vmem:[#allocation2 + $0x48] sm:$0xff] }
  0x84   :  { %1140 = vmatprep.subr.mxu0 %v117_v27  ;;  %656 = vmatmul.mubr.f32.gmra.mxu1 %v231_v28  ;;  %v167_v27 = vld [vmem:[#allocation7 + $0x270] sm:$0xff] }
  0x85   :  { %1178 = vmatprep.subr.mxu1 %v149_v29  ;;  %1141 = vmatpush3.msra.mxu0 %v101_v30  ;;  %v199_v28 = vld [vmem:[#allocation7 + $0x370] sm:$0xff]  ;;  %v81_v29 = vld [vmem:[#allocation2 + $0x40] sm:$0xff]  ;;  %v182_v30 = vld [vmem:[#allocation7 + $0x2e8] sm:$0xff] }
  0x86   :  { %1179 = vmatpush3.msra.mxu1 %v133_v31  ;;  %1142 = vmatprep.subr.mxu0 %v116_v32  ;;  %v214_v31 = vld [vmem:[#allocation7 + $0x3e8] sm:$0xff]  ;;  %v84_v32 = vld [vmem:[#allocation2 + $0x58] sm:$0xff] }
  0x87   :  { %1180 = vmatprep.subr.mxu1 %v148_v33  ;;  %1143 = vmatpush3.msra.mxu0 %v100_v34  ;;  %v166_v33 = vld [vmem:[#allocation7 + $0x268] sm:$0xff] }
  0x88   :  { %1181 = vmatpush3.msra.mxu1 %v132_v35  ;;  %1144 = vmatprep.subr.mxu0 %v115_v36  ;;  %v198_v34 = vld [vmem:[#allocation7 + $0x368] sm:$0xff]  ;;  %v181_v35 = vld [vmem:[#allocation7 + $0x2e0] sm:$0xff]  ;;  %v83_v36 = vld [vmem:[#allocation2 + $0x50] sm:$0xff] }
  0x89   :  { %1182 = vmatprep.subr.mxu1 %v147_v37  ;;  %1145 = vmatpush3.msra.mxu0 %v99_v38  ;;  %v213_v37 = vld [vmem:[#allocation7 + $0x3e0] sm:$0xff] }
  0x8a   :  { %1183 = vmatpush3.msra.mxu1 %v131_v39  ;;  %1146 = vmatprep.subr.mxu0 %v114_v40  ;;  %v165_v38 = vld [vmem:[#allocation7 + $0x260] sm:$0xff]  ;;  %v180_v40 = vld [vmem:[#allocation7 + $0x2d8] sm:$0xff] }
  0x8b   :  { %1184 = vmatprep.subr.mxu1 %v146_v41  ;;  %1147 = vmatpush3.msra.mxu0 %v98_v42  ;;  %v197_v39 = vld [vmem:[#allocation7 + $0x360] sm:$0xff]  ;;  %v212_v41 = vld [vmem:[#allocation7 + $0x3d8] sm:$0xff] }
  0x8c   :  { %1185 = vmatpush3.msra.mxu1 %v130_v43  ;;  %1148 = vmatprep.subr.mxu0 %v113_v44  ;;  %v164_v42 = vld [vmem:[#allocation7 + $0x258] sm:$0xff]  ;;  %v179_v44 = vld [vmem:[#allocation7 + $0x2d0] sm:$0xff] }
  0x8d   :  { %1186 = vmatprep.subr.mxu1 %v145_v45  ;;  %1149 = vmatpush3.msra.mxu0 %v97_v46  ;;  %v196_v43 = vld [vmem:[#allocation7 + $0x358] sm:$0xff]  ;;  %v211_v45 = vld [vmem:[#allocation7 + $0x3d0] sm:$0xff] }
  0x8e   :  { %1187 = vmatpush3.msra.mxu1 %v129_v47  ;;  %1150 = vmatprep.subr.mxu0 %v112_v48  ;;  %v163_v46 = vld [vmem:[#allocation7 + $0x250] sm:$0xff]  ;;  %v178_v48 = vld [vmem:[#allocation7 + $0x2c8] sm:$0xff] }
  0x8f   :  { %1188 = vmatprep.subr.mxu1 %v144_v49  ;;  %1151 = vmatpush3.msra.mxu0 %v96_v50  ;;  %v195_v47 = vld [vmem:[#allocation7 + $0x350] sm:$0xff]  ;;  %v210_v49 = vld [vmem:[#allocation7 + $0x3c8] sm:$0xff] }
  0x90   :  { %1189 = vmatpush3.msra.mxu1 %v128_v51  ;;  %1152 = vmatprep.subr.mxu0 %v111_v52  ;;  %v162_v50 = vld [vmem:[#allocation7 + $0x248] sm:$0xff]  ;;  %v177_v52 = vld [vmem:[#allocation7 + $0x2c0] sm:$0xff] }
  0x91   :  { %1190 = vmatprep.subr.mxu1 %v143_v53  ;;  %1153 = vmatpush3.msra.mxu0 %v95_v54  ;;  %v194_v51 = vld [vmem:[#allocation7 + $0x348] sm:$0xff]  ;;  %v209_v53 = vld [vmem:[#allocation7 + $0x3c0] sm:$0xff] }
  0x92   :  { %1191 = vmatpush3.msra.mxu1 %v127_v55  ;;  %1154 = vmatprep.subr.mxu0 %v110_v56  ;;  %v161_v54 = vld [vmem:[#allocation7 + $0x240] sm:$0xff]  ;;  %v176_v56 = vld [vmem:[#allocation7 + $0x2b8] sm:$0xff] }
  0x93   :  { %1192 = vmatprep.subr.mxu1 %v142_v57  ;;  %1155 = vmatpush3.msra.mxu0 %v94_v58  ;;  %v193_v55 = vld [vmem:[#allocation7 + $0x340] sm:$0xff]  ;;  %v208_v57 = vld [vmem:[#allocation7 + $0x3b8] sm:$0xff] }
  0x94   :  { %1193 = vmatpush3.msra.mxu1 %v126_v59  ;;  %1156 = vmatprep.subr.mxu0 %v109_v60  ;;  %v160_v58 = vld [vmem:[#allocation7 + $0x238] sm:$0xff]  ;;  %v175_v60 = vld [vmem:[#allocation7 + $0x2b0] sm:$0xff] }
  0x95   :  { %1194 = vmatprep.subr.mxu1 %v141_v61  ;;  %1157 = vmatpush3.msra.mxu0 %v93_v62  ;;  %v192_v59 = vld [vmem:[#allocation7 + $0x338] sm:$0xff]  ;;  %v207_v61 = vld [vmem:[#allocation7 + $0x3b0] sm:$0xff] }
  0x96   :  { %1195 = vmatpush3.msra.mxu1 %v125_v63  ;;  %1158 = vmatprep.subr.mxu0 %v108_v0  ;;  %v159_v62 = vld [vmem:[#allocation7 + $0x230] sm:$0xff]  ;;  %v174_v0 = vld [vmem:[#allocation7 + $0x2a8] sm:$0xff] }
  0x97   :  { %1196 = vmatprep.subr.mxu1 %v140_v1  ;;  %1159 = vmatpush3.msra.mxu0 %v92_v2  ;;  %v191_v63 = vld [vmem:[#allocation7 + $0x330] sm:$0xff]  ;;  %v206_v1 = vld [vmem:[#allocation7 + $0x3a8] sm:$0xff] }
  0x98   :  { %1197 = vmatpush3.msra.mxu1 %v124_v3  ;;  %1160 = vmatprep.subr.mxu0 %v107_v4  ;;  %v158_v2 = vld [vmem:[#allocation7 + $0x228] sm:$0xff]  ;;  %v173_v4 = vld [vmem:[#allocation7 + $0x2a0] sm:$0xff] }
  0x99   :  { %1198 = vmatprep.subr.mxu1 %v139_v5  ;;  %1161 = vmatpush3.msra.mxu0 %v91_v6  ;;  %v190_v3 = vld [vmem:[#allocation7 + $0x328] sm:$0xff]  ;;  %v205_v5 = vld [vmem:[#allocation7 + $0x3a0] sm:$0xff] }
  0x9a   :  { %1199 = vmatpush3.msra.mxu1 %v123_v7  ;;  %1162 = vmatprep.subr.mxu0 %v106_v8  ;;  %v157_v6 = vld [vmem:[#allocation7 + $0x220] sm:$0xff]  ;;  %v172_v8 = vld [vmem:[#allocation7 + $0x298] sm:$0xff] }
  0x9b   :  { %1200 = vmatprep.subr.mxu1 %v138_v9  ;;  %1163 = vmatpush3.msra.mxu0 %v90_v10  ;;  %v189_v7 = vld [vmem:[#allocation7 + $0x320] sm:$0xff]  ;;  %v204_v9 = vld [vmem:[#allocation7 + $0x398] sm:$0xff] }
  0x9c   :  { %1201 = vmatpush3.msra.mxu1 %v122_v11  ;;  %1164 = vmatprep.subr.mxu0 %v105_v12  ;;  %v156_v10 = vld [vmem:[#allocation7 + $0x218] sm:$0xff]  ;;  %v171_v12 = vld [vmem:[#allocation7 + $0x290] sm:$0xff] }
  0x9d   :  { %1202 = vmatprep.subr.mxu1 %v137_v13  ;;  %1165 = vmatpush3.msra.mxu0 %v89_v14  ;;  %v188_v11 = vld [vmem:[#allocation7 + $0x318] sm:$0xff]  ;;  %v203_v13 = vld [vmem:[#allocation7 + $0x390] sm:$0xff] }
  0x9e   :  { %725 = vmatprep.mubr.f32.mxu0 %v74_v15  ;;  %1203 = vmatpush3.msra.mxu1 %v121_v16  ;;  %v155_v14 = vld [vmem:[#allocation7 + $0x210] sm:$0xff]  ;;  %v170_v16 = vld [vmem:[#allocation7 + $0x288] sm:$0xff] }
  0x9f   :  { %726 = vmatmul.mubr.f32.vlgmr.msra.gmra.mxu0 %v73_v17  ;;  %800 = vmatprep.mubr.f32.mxu1 %v76_v18  ;;  %v187_v15 = vld [vmem:[#allocation7 + $0x310] sm:$0xff]  ;;  %v202_v17 = vld [vmem:[#allocation7 + $0x388] sm:$0xff] }
  0xa0   :  { %1210 = vmatprep.subr.mxu0 %v184_v19  ;;  %1248 = vmatprep.subr.mxu1 %v216_v20  ;;  %v154_v18 = vld [vmem:[#allocation7 + $0x208] sm:$0xff]  ;;  %v169_v20 = vld [vmem:[#allocation7 + $0x280] sm:$0xff] }
  0xa1   :  { %801 = vmatmul.mubr.f32.vlgmr.msra.gmra.mxu1 %v75_v21  ;;  %1211 = vmatpush3.msra.mxu0 %v168_v22  ;;  %v186_v19 = vld [vmem:[#allocation7 + $0x308] sm:$0xff]  ;;  %v201_v21 = vld [vmem:[#allocation7 + $0x380] sm:$0xff] }
  0xa2   :  { %1249 = vmatpush3.msra.mxu1 %v200_v23  ;;  %1212 = vmatprep.subr.mxu0 %v183_v24  ;;  %v153_v22 = vld [vmem:[#allocation7 + $0x200] sm:$0xff]  ;;  %v78_v23 = vld [vmem:[#allocation2 + $0x28] sm:$0xff] }
  0xa3   :  { %1250 = vmatprep.subr.mxu1 %v215_v25  ;;  %730 = vmatprep.mubr.f32.mxu0 %v82_v26  ;;  %v185_v24 = vld [vmem:[#allocation7 + $0x300] sm:$0xff]  ;;  %v80_v25 = vld [vmem:[#allocation2 + $0x38] sm:$0xff] }
  0xa4   :  { %1213 = vmatpush3.msra.mxu0 %v167_v27  ;;  %1251 = vmatpush3.msra.mxu1 %v199_v28  ;;  %v77_v26 = vld [vmem:[#allocation2 + $0x20] sm:$0xff]  ;;  %v79_v27 = vld [vmem:[#allocation2 + $0x30] sm:$0xff]  ;;  %v86_v28 = vld [vmem:[#allocation2 + $0x68] sm:$0xff] }
  0xa5   :  { %731 = vmatmul.mubr.f32.gmra.mxu0 %v81_v29  ;;  %1214 = vmatprep.subr.mxu0 %v182_v30  ;;  %v88_v29 = vld [vmem:[#allocation2 + $0x78] sm:$0xff]  ;;  %v85_v30 = vld [vmem:[#allocation2 + $0x60] sm:$0xff] }
  0xa6   :  { %1252 = vmatprep.subr.mxu1 %v214_v31  ;;  %805 = vmatprep.mubr.f32.mxu1 %v84_v32  ;;  %v87_v31 = vld [vmem:[#allocation2 + $0x70] sm:$0xff] }
  0xa7   :  { %1215 = vmatpush3.msra.mxu0 %v166_v33  ;;  %1253 = vmatpush3.msra.mxu1 %v198_v34 }
  0xa8   :  { %1216 = vmatprep.subr.mxu0 %v181_v35  ;;  %806 = vmatmul.mubr.f32.gmra.mxu1 %v83_v36 }
  0xa9   :  { %1254 = vmatprep.subr.mxu1 %v213_v37  ;;  %1217 = vmatpush3.msra.mxu0 %v165_v38 }
  0xaa   :  { %1255 = vmatpush3.msra.mxu1 %v197_v39  ;;  %1218 = vmatprep.subr.mxu0 %v180_v40 }
  0xab   :  { %1256 = vmatprep.subr.mxu1 %v212_v41  ;;  %1219 = vmatpush3.msra.mxu0 %v164_v42 }
  0xac   :  { %1257 = vmatpush3.msra.mxu1 %v196_v43  ;;  %1220 = vmatprep.subr.mxu0 %v179_v44 }
  0xad   :  { %1258 = vmatprep.subr.mxu1 %v211_v45  ;;  %1221 = vmatpush3.msra.mxu0 %v163_v46 }
  0xae   :  { %1259 = vmatpush3.msra.mxu1 %v195_v47  ;;  %1222 = vmatprep.subr.mxu0 %v178_v48 }
  0xaf   :  { %1260 = vmatprep.subr.mxu1 %v210_v49  ;;  %1223 = vmatpush3.msra.mxu0 %v162_v50 }
  0xb0   :  { %1261 = vmatpush3.msra.mxu1 %v194_v51  ;;  %1224 = vmatprep.subr.mxu0 %v177_v52 }
  0xb1   :  { %1262 = vmatprep.subr.mxu1 %v209_v53  ;;  %1225 = vmatpush3.msra.mxu0 %v161_v54 }
  0xb2   :  { %1263 = vmatpush3.msra.mxu1 %v193_v55  ;;  %1226 = vmatprep.subr.mxu0 %v176_v56 }
  0xb3   :  { %1264 = vmatprep.subr.mxu1 %v208_v57  ;;  %1227 = vmatpush3.msra.mxu0 %v160_v58 }
  0xb4   :  { %1265 = vmatpush3.msra.mxu1 %v192_v59  ;;  %1228 = vmatprep.subr.mxu0 %v175_v60 }
  0xb5   :  { %1266 = vmatprep.subr.mxu1 %v207_v61  ;;  %1229 = vmatpush3.msra.mxu0 %v159_v62 }
  0xb6   :  { %1267 = vmatpush3.msra.mxu1 %v191_v63  ;;  %1230 = vmatprep.subr.mxu0 %v174_v0 }
  0xb7   :  { %1268 = vmatprep.subr.mxu1 %v206_v1  ;;  %1231 = vmatpush3.msra.mxu0 %v158_v2 }
  0xb8   :  { %1269 = vmatpush3.msra.mxu1 %v190_v3  ;;  %1232 = vmatprep.subr.mxu0 %v173_v4 }
  0xb9   :  { %1270 = vmatprep.subr.mxu1 %v205_v5  ;;  %1233 = vmatpush3.msra.mxu0 %v157_v6 }
  0xba   :  { %1271 = vmatpush3.msra.mxu1 %v189_v7  ;;  %1234 = vmatprep.subr.mxu0 %v172_v8 }
  0xbb   :  { %1272 = vmatprep.subr.mxu1 %v204_v9  ;;  %1235 = vmatpush3.msra.mxu0 %v156_v10 }
  0xbc   :  { %1273 = vmatpush3.msra.mxu1 %v188_v11  ;;  %1236 = vmatprep.subr.mxu0 %v171_v12 }
  0xbd   :  { %1274 = vmatprep.subr.mxu1 %v203_v13  ;;  %1237 = vmatpush3.msra.mxu0 %v155_v14 }
  0xbe   :  { %1275 = vmatpush3.msra.mxu1 %v187_v15  ;;  %1238 = vmatprep.subr.mxu0 %v170_v16 }
  0xbf   :  { %1276 = vmatprep.subr.mxu1 %v202_v17  ;;  %1239 = vmatpush3.msra.mxu0 %v154_v18 }
  0xc0   :  { %1277 = vmatpush3.msra.mxu1 %v186_v19  ;;  %1240 = vmatprep.subr.mxu0 %v169_v20 }
  0xc1   :  { %1278 = vmatprep.subr.mxu1 %v201_v21  ;;  %1241 = vmatpush3.msra.mxu0 %v153_v22 }
  0xc2   :  { %875 = vmatprep.mubr.f32.mxu0 %v78_v23  ;;  %1279 = vmatpush3.msra.mxu1 %v185_v24 }
  0xc3   :  { %950 = vmatprep.mubr.f32.mxu1 %v80_v25  ;;  %876 = vmatmul.mubr.f32.vlgmr.msra.gmra.mxu0 %v77_v26 }
  0xc4   :  { %951 = vmatmul.mubr.f32.vlgmr.msra.gmra.mxu1 %v79_v27  ;;  %880 = vmatprep.mubr.f32.mxu0 %v86_v28 }
  0xc5   :  { %955 = vmatprep.mubr.f32.mxu1 %v88_v29 }
  0xc7   :  { %881 = vmatmul.mubr.f32.gmra.mxu0 %v85_v30 }
  0xc8   :  { %956 = vmatmul.mubr.f32.gmra.mxu1 %v87_v31 }
 0x117   :  { %v1014_v32 = vpop.f32.mrf.mxu0 }
 0x118   :  { %v1052_v33 = vpop.f32.mrf.mxu1 }
 0x119   :  { %v1015_v34 = vpop.f32.mrf.mxu0 }
 0x11a   :  { %v1053_v36 = vpop.f32.mrf.mxu1  ;;  %v1016_v50 = vadd.f32 %v1015_v34, %v1014_v32 }
 0x11b   :  { %v1054_v51 = vadd.f32 %v1053_v36, %v1052_v33 }
 0x11d   :  { %v503_v55 = vadd.f32 %v1054_v51, %v1016_v50 }
 0x134   :  { %v1017_v35 = vpop.f32.mrf.mxu0 }
 0x135   :  { %v1055_v37 = vpop.f32.mrf.mxu1 }
 0x136   :  { %v1018_v38 = vpop.f32.mrf.mxu0 }
 0x137   :  { %v1056_v39 = vpop.f32.mrf.mxu1  ;;  %v1019_v56 = vadd.f32 %v1018_v38, %v1017_v35 }
 0x138   :  { %v1057_v57 = vadd.f32 %v1056_v39, %v1055_v37 }
 0x13a   :  { %v508_v63 = vadd.f32 %v1057_v57, %v1019_v56 }
 0x13b   :  { %v1090_v40 = vpop.f32.mrf.mxu0 }
 0x13d   :  { %v1128_v41 = vpop.f32.mrf.mxu1  ;;  %v1091_v42 = vpop.f32.mrf.mxu0 }
 0x13e   :  { %v1092_v53 = vadd.f32 %v1091_v42, %v1090_v40 }
 0x13f   :  { %v1129_v43 = vpop.f32.mrf.mxu1 }
 0x140   :  { %v578_v59 = vadd.f32 %v1092_v53, %v503_v55  ;;  %v1130_v60 = vadd.f32 %v1129_v43, %v1128_v41 }
 0x141   :  { %v1093_v44 = vpop.f32.mrf.mxu0 }
 0x142   :  { %v653_v2 = vadd.f32 %v1130_v60, %v578_v59 }
 0x143   :  { %v1094_v46 = vpop.f32.mrf.mxu0 }
 0x144   :  { %v1131_v45 = vpop.f32.mrf.mxu1  ;;  %v1095_v61 = vadd.f32 %v1094_v46, %v1093_v44 }
 0x146   :  { %v1132_v47 = vpop.f32.mrf.mxu1  ;;  %v583_v3 = vadd.f32 %v1095_v61, %v508_v63 }
 0x147   :  { %v1133_v4 = vadd.f32 %v1132_v47, %v1131_v45 }
 0x149   :  { %v658_v11 = vadd.f32 %v1133_v4, %v583_v3 }
 0x15f   :  { %v1166_v48 = vpop.f32.mrf.mxu0 }
 0x161   :  { %v1204_v49 = vpop.f32.mrf.mxu1  ;;  %v1167_v52 = vpop.f32.mrf.mxu0 }
 0x162   :  { %v1168_v0 = vadd.f32 %v1167_v52, %v1166_v48 }
 0x163   :  { %v1205_v54 = vpop.f32.mrf.mxu1 }
 0x164   :  { %v728_v6 = vadd.f32 %v1168_v0, %v653_v2  ;;  %v1206_v7 = vadd.f32 %v1205_v54, %v1204_v49 }
 0x165   :  { %v1169_v58 = vpop.f32.mrf.mxu0 }
 0x166   :  { %v803_v14 = vadd.f32 %v1206_v7, %v728_v6 }
 0x167   :  { %v1170_v1 = vpop.f32.mrf.mxu0 }
 0x168   :  { %v1207_v62 = vpop.f32.mrf.mxu1  ;;  %v1171_v8 = vadd.f32 %v1170_v1, %v1169_v58 }
 0x16a   :  { %v1208_v5 = vpop.f32.mrf.mxu1  ;;  %v733_v15 = vadd.f32 %v1171_v8, %v658_v11 }
 0x16b   :  { %v1209_v16 = vadd.f32 %v1208_v5, %v1207_v62 }
 0x16d   :  { %v808_v24 = vadd.f32 %v1209_v16, %v733_v15 }
 0x183   :  { %v1242_v9 = vpop.f32.mrf.mxu0 }
 0x184   :  { %v1280_v10 = vpop.f32.mrf.mxu1 }
 0x185   :  { %v1243_v12 = vpop.f32.mrf.mxu0 }
 0x186   :  { %v1281_v13 = vpop.f32.mrf.mxu1  ;;  %v1244_v17 = vadd.f32 %v1243_v12, %v1242_v9 }
 0x187   :  { %v1245_v18 = vpop.f32.mrf.mxu0  ;;  %v1282_v21 = vadd.f32 %v1281_v13, %v1280_v10 }
 0x188   :  { %v1283_v19 = vpop.f32.mrf.mxu1  ;;  %v878_v20 = vadd.f32 %v1244_v17, %v803_v14 }
 0x189   :  { %v1246_v22 = vpop.f32.mrf.mxu0 }
 0x18a   :  { %v1284_v23 = vpop.f32.mrf.mxu1  ;;  %v953_v25 = vadd.f32 %v1282_v21, %v878_v20  ;;  %v1247_v26 = vadd.f32 %v1246_v22, %v1245_v18 }
 0x18b   :  { %v1285_v28 = vadd.f32 %v1284_v23, %v1283_v19 }
 0x18c   :  { %961 = vst [vmem:[#allocation10] sm:$0xff] %v953_v25  ;;  %v883_v27 = vadd.f32 %v1247_v26, %v808_v24 }
 0x18e   :  { %v958_v29 = vadd.f32 %v1285_v28, %v883_v27 }
 0x190   :  { %962 = vst [vmem:[#allocation10 + $0x8] sm:$0xff] %v958_v29 }
 0x191   :  { %1386 = shalt.err (!%p1383_p10)
}
 0x192   :  { %974 = dma.vmem_to_hbm [thread:$0]  %s969_s3, 256, %s1465_s4, [#allocation4], %s1408_s1, %s1408_s1, %s1409_s30  }
 0x193   :  { %1401 = dma.done.wait [#allocation4], 256  }
 0x194   :  { %1402 = vsyncadd [#allocation4], 4294967040 }
 0x195   :  { %978 = vsyncpa [#allocation3], 1 }
 0x196   :  { %979 = vsyncpa [#allocation6], 1 }
 0x197   :  { %980 = vsyncpa [#allocation9], 1 }
 0x198   :  { %981 = vsyncpa [#allocation4], 1 }

// kernel: tpu_custom_call.1
= control target key start
LH: loop header
LB: loop body
LE: loop exit
PB: predicated region body
PF: predicated region fallthrough
CT: control target
= control target key end

     0   :  { %9 = vsyncpa [#allocation3], 0  ;;  %s1461_s0 = inlined_call_operand.hbm [shape: f32[16,1024], index: 0, kind: input, shape index: {}]   ;;  %s1462_s1 = inlined_call_operand.hbm [shape: f32[16,1024], index: 1, kind: input, shape index: {}]   ;;  %s1463_s2 = inlined_call_operand.hbm [shape: f32[1024,128], index: 2, kind: input, shape index: {}]   ;;  %s1464_s3 = inlined_call_operand.hbm [shape: f32[1024,128], index: 3, kind: input, shape index: {}]   ;;  %s1465_s4 = inlined_call_operand.hbm [shape: f32[16,128], index: 4, kind: output, shape index: {}]  }
   0x1   :  { %10 = vsyncpa [#allocation6], 0 }
   0x2   :  { %11 = vsyncpa [#allocation9], 0 }
   0x3   :  { %12 = vsyncpa [#allocation4], 0  ;;  %s1403_s15 = smov [#allocation5]   ;;  %s1404_s17 = smov [#allocation2]  }
   0x4   :  { %s30_s16 = sshll.u32 %s1403_s15, 4  ;;  %s18_s18 = sshll.u32 %s1404_s17, 4  ;;  %s31_s16 = int_to_ptr.vmem [resolvable:$true] %s30_s16  ;;  %s19_s18 = int_to_ptr.vmem [resolvable:$true] %s18_s18 }
   0x5   :  { %s1303_s19 = scalar_lea.vmem %s31_s16, 2048  ;;  %p1308_p1 = scmp.lt.s32.totalorder %s31_s16, %s31_s16 }
   0x6   :  { %p1304_p0 = scmp.ne.s32.totalorder %s31_s16, %s1303_s19  ;;  %p1309_p2 = scmp.lt.s32.totalorder %s1303_s19, %s1303_s19 }
   0x8   :  { %p1310_p3 = por %p1309_p2, %p1308_p1 }
   0xa   :  { %p1311_p4 = pnand %p1310_p3, %p1304_p0 }
   0xc   :  { %1314 = shalt.err (!%p1311_p4)
}
   0xd   :  { %s1405_s20 = smov 1024   ;;  %s1406_s21 = smov 64  }
   0xe   :  { %36 = dma.hbm_to_vmem [thread:$0]  %s1462_s1, 2048, %s31_s16, [#allocation6], %s1405_s20, %s1405_s20, %s1406_s21  }
   0xf   :  { %s1323_s24 = scalar_lea.vmem %s19_s18, 2048  ;;  %p1328_p6 = scmp.lt.s32.totalorder %s19_s18, %s19_s18 }
  0x10   :  { %p1324_p5 = scmp.ne.s32.totalorder %s19_s18, %s1323_s24  ;;  %p1329_p7 = scmp.lt.s32.totalorder %s1323_s24, %s1323_s24 }
  0x12   :  { %p1330_p8 = por %p1329_p7, %p1328_p6 }
  0x14   :  { %p1331_p9 = pnand %p1330_p8, %p1324_p5 }
  0x16   :  { %1334 = shalt.err (!%p1331_p9)
}
  0x17   :  { %24 = dma.hbm_to_vmem [thread:$0]  %s1461_s0, 2048, %s19_s18, [#allocation3], %s1405_s20, %s1405_s20, %s1406_s21  }
  0x18   :  { %s1407_s27 = smov [#allocation7]  }
  0x19   :  { %s42_s28 = sshll.u32 %s1407_s27, 4  ;;  %s43_s28 = int_to_ptr.vmem [resolvable:$true] %s42_s28 }
  0x1a   :  { %s1343_s29 = scalar_lea.vmem %s43_s28, 16384  ;;  %p1348_p11 = scmp.lt.s32.totalorder %s43_s28, %s43_s28 }
  0x1b   :  { %p1344_p10 = scmp.ne.s32.totalorder %s43_s28, %s1343_s29  ;;  %p1349_p12 = scmp.lt.s32.totalorder %s1343_s29, %s1343_s29 }
  0x1d   :  { %p1350_p13 = por %p1349_p12, %p1348_p11 }
  0x1f   :  { %p1351_p0 = pnand %p1350_p13, %p1344_p10 }
  0x21   :  { %1354 = shalt.err (!%p1351_p0)
}
  0x22   :  { %s1408_s1 = smov 128   ;;  %s1409_s30 = smov 8  }
  0x23   :  { %48 = dma.hbm_to_vmem [thread:$0]  %s1463_s2, 16384, %s43_s28, [#allocation6], %s1408_s1, %s1408_s1, %s1409_s30  }
  0x24   :  { %s1410_s0 = smov [#allocation8]  }
  0x25   :  { %s54_s7 = sshll.u32 %s1410_s0, 4  ;;  %s55_s7 = int_to_ptr.vmem [resolvable:$true] %s54_s7 }
  0x26   :  { %s1363_s8 = scalar_lea.vmem %s55_s7, 16384  ;;  %p1368_p2 = scmp.lt.s32.totalorder %s55_s7, %s55_s7 }
  0x27   :  { %p1364_p1 = scmp.ne.s32.totalorder %s55_s7, %s1363_s8  ;;  %p1369_p3 = scmp.lt.s32.totalorder %s1363_s8, %s1363_s8 }
  0x29   :  { %p1370_p4 = por %p1369_p3, %p1368_p2 }
  0x2b   :  { %p1371_p5 = pnand %p1370_p4, %p1364_p1 }
  0x2d   :  { %1374 = shalt.err (!%p1371_p5)
}
  0x2e   :  { %60 = dma.hbm_to_vmem [thread:$0]  %s1464_s3, 16384, %s55_s7, [#allocation9], %s1408_s1, %s1408_s1, %s1409_s30  }
  0x2f   :  { %1395 = dma.done.wait [#allocation3], 2048  }
  0x30   :  { %1396 = vsyncadd [#allocation3], 4294965248 }
  0x31   :  { %1397 = dma.done.wait [#allocation6], 18432  }
  0x32   :  { %1398 = vsyncadd [#allocation6], 4294948864 }
  0x33   :  { %1399 = dma.done.wait [#allocation9], 16384  }
  0x34   :  { %1400 = vsyncadd [#allocation9], 4294950912  ;;  %v264_v0 = vld [vmem:[#allocation8 + $0xf8] sm:$0xff]  ;;  %v263_v4 = vld [vmem:[#allocation8 + $0xf0] sm:$0xff]  ;;  %s1411_s2 = smov [#allocation10]  }
  0x35   :  { %v296_v1 = vld [vmem:[#allocation8 + $0x1f8] sm:$0xff]  ;;  %982 = vmatprep.subr.mxu0 %v264_v0  ;;  %v295_v5 = vld [vmem:[#allocation8 + $0x1f0] sm:$0xff]  ;;  %v262_v8 = vld [vmem:[#allocation8 + $0xe8] sm:$0xff]  ;;  %s968_s3 = sshll.u32 %s1411_s2, 4  ;;  %s969_s3 = int_to_ptr.vmem [resolvable:$true] %s968_s3 }
  0x36   :  { %v248_v2 = vld [vmem:[#allocation8 + $0x78] sm:$0xff]  ;;  %1020 = vmatprep.subr.mxu1 %v296_v1  ;;  %v247_v6 = vld [vmem:[#allocation8 + $0x70] sm:$0xff]  ;;  %v294_v9 = vld [vmem:[#allocation8 + $0x1e8] sm:$0xff]  ;;  %s1375_s11 = scalar_lea.vmem %s969_s3, 256  ;;  %p1380_p7 = scmp.lt.s32.totalorder %s969_s3, %s969_s3 }
  0x37   :  { %v280_v3 = vld [vmem:[#allocation8 + $0x178] sm:$0xff]  ;;  %983 = vmatpush3.msra.mxu0 %v248_v2  ;;  %v279_v7 = vld [vmem:[#allocation8 + $0x170] sm:$0xff]  ;;  %v246_v10 = vld [vmem:[#allocation8 + $0x68] sm:$0xff]  ;;  %p1376_p6 = scmp.ne.s32.totalorder %s969_s3, %s1375_s11  ;;  %p1381_p8 = scmp.lt.s32.totalorder %s1375_s11, %s1375_s11 }
  0x38   :  { %1021 = vmatpush3.msra.mxu1 %v280_v3  ;;  %984 = vmatprep.subr.mxu0 %v263_v4  ;;  %v278_v11 = vld [vmem:[#allocation8 + $0x168] sm:$0xff]  ;;  %v261_v12 = vld [vmem:[#allocation8 + $0xe0] sm:$0xff]  ;;  %v260_v16 = vld [vmem:[#allocation8 + $0xd8] sm:$0xff] }
  0x39   :  { %1022 = vmatprep.subr.mxu1 %v295_v5  ;;  %985 = vmatpush3.msra.mxu0 %v247_v6  ;;  %v293_v13 = vld [vmem:[#allocation8 + $0x1e0] sm:$0xff]  ;;  %v292_v17 = vld [vmem:[#allocation8 + $0x1d8] sm:$0xff]  ;;  %v259_v20 = vld [vmem:[#allocation8 + $0xd0] sm:$0xff]  ;;  %p1382_p9 = por %p1381_p8, %p1380_p7 }
  0x3a   :  { %1023 = vmatpush3.msra.mxu1 %v279_v7  ;;  %986 = vmatprep.subr.mxu0 %v262_v8  ;;  %v245_v14 = vld [vmem:[#allocation8 + $0x60] sm:$0xff]  ;;  %v244_v18 = vld [vmem:[#allocation8 + $0x58] sm:$0xff]  ;;  %v291_v21 = vld [vmem:[#allocation8 + $0x1d0] sm:$0xff] }
  0x3b   :  { %1024 = vmatprep.subr.mxu1 %v294_v9  ;;  %v277_v15 = vld [vmem:[#allocation8 + $0x160] sm:$0xff]  ;;  %987 = vmatpush3.msra.mxu0 %v246_v10  ;;  %v276_v19 = vld [vmem:[#allocation8 + $0x158] sm:$0xff]  ;;  %v243_v22 = vld [vmem:[#allocation8 + $0x50] sm:$0xff]  ;;  %p1383_p10 = pnand %p1382_p9, %p1376_p6 }
  0x3c   :  { %1025 = vmatpush3.msra.mxu1 %v278_v11  ;;  %988 = vmatprep.subr.mxu0 %v261_v12  ;;  %v275_v23 = vld [vmem:[#allocation8 + $0x150] sm:$0xff]  ;;  %v258_v24 = vld [vmem:[#allocation8 + $0xc8] sm:$0xff]  ;;  %v257_v28 = vld [vmem:[#allocation8 + $0xc0] sm:$0xff] }
  0x3d   :  { %1026 = vmatprep.subr.mxu1 %v293_v13  ;;  %989 = vmatpush3.msra.mxu0 %v245_v14  ;;  %v290_v25 = vld [vmem:[#allocation8 + $0x1c8] sm:$0xff]  ;;  %v289_v29 = vld [vmem:[#allocation8 + $0x1c0] sm:$0xff]  ;;  %v256_v32 = vld [vmem:[#allocation8 + $0xb8] sm:$0xff] }
  0x3e   :  { %1027 = vmatpush3.msra.mxu1 %v277_v15  ;;  %990 = vmatprep.subr.mxu0 %v260_v16  ;;  %v242_v26 = vld [vmem:[#allocation8 + $0x48] sm:$0xff]  ;;  %v241_v30 = vld [vmem:[#allocation8 + $0x40] sm:$0xff]  ;;  %v288_v33 = vld [vmem:[#allocation8 + $0x1b8] sm:$0xff] }
  0x3f   :  { %1028 = vmatprep.subr.mxu1 %v292_v17  ;;  %991 = vmatpush3.msra.mxu0 %v244_v18  ;;  %v274_v27 = vld [vmem:[#allocation8 + $0x148] sm:$0xff]  ;;  %v273_v31 = vld [vmem:[#allocation8 + $0x140] sm:$0xff]  ;;  %v240_v34 = vld [vmem:[#allocation8 + $0x38] sm:$0xff] }
  0x40   :  { %1029 = vmatpush3.msra.mxu1 %v276_v19  ;;  %992 = vmatprep.subr.mxu0 %v259_v20  ;;  %v272_v35 = vld [vmem:[#allocation8 + $0x138] sm:$0xff]  ;;  %v255_v36 = vld [vmem:[#allocation8 + $0xb0] sm:$0xff]  ;;  %v254_v40 = vld [vmem:[#allocation8 + $0xa8] sm:$0xff] }
  0x41   :  { %1030 = vmatprep.subr.mxu1 %v291_v21  ;;  %993 = vmatpush3.msra.mxu0 %v243_v22  ;;  %v287_v37 = vld [vmem:[#allocation8 + $0x1b0] sm:$0xff]  ;;  %v286_v41 = vld [vmem:[#allocation8 + $0x1a8] sm:$0xff]  ;;  %v253_v44 = vld [vmem:[#allocation8 + $0xa0] sm:$0xff] }
  0x42   :  { %1031 = vmatpush3.msra.mxu1 %v275_v23  ;;  %994 = vmatprep.subr.mxu0 %v258_v24  ;;  %v239_v38 = vld [vmem:[#allocation8 + $0x30] sm:$0xff]  ;;  %v238_v42 = vld [vmem:[#allocation8 + $0x28] sm:$0xff]  ;;  %v285_v45 = vld [vmem:[#allocation8 + $0x1a0] sm:$0xff] }
  0x43   :  { %1032 = vmatprep.subr.mxu1 %v290_v25  ;;  %995 = vmatpush3.msra.mxu0 %v242_v26  ;;  %v271_v39 = vld [vmem:[#allocation8 + $0x130] sm:$0xff]  ;;  %v270_v43 = vld [vmem:[#allocation8 + $0x128] sm:$0xff]  ;;  %v237_v46 = vld [vmem:[#allocation8 + $0x20] sm:$0xff] }
  0x44   :  { %1033 = vmatpush3.msra.mxu1 %v274_v27  ;;  %996 = vmatprep.subr.mxu0 %v257_v28  ;;  %v269_v47 = vld [vmem:[#allocation8 + $0x120] sm:$0xff]  ;;  %v252_v48 = vld [vmem:[#allocation8 + $0x98] sm:$0xff]  ;;  %v251_v52 = vld [vmem:[#allocation8 + $0x90] sm:$0xff] }
  0x45   :  { %1034 = vmatprep.subr.mxu1 %v289_v29  ;;  %997 = vmatpush3.msra.mxu0 %v241_v30  ;;  %v284_v49 = vld [vmem:[#allocation8 + $0x198] sm:$0xff]  ;;  %v283_v53 = vld [vmem:[#allocation8 + $0x190] sm:$0xff]  ;;  %v250_v56 = vld [vmem:[#allocation8 + $0x88] sm:$0xff] }
  0x46   :  { %1035 = vmatpush3.msra.mxu1 %v273_v31  ;;  %998 = vmatprep.subr.mxu0 %v256_v32  ;;  %v236_v50 = vld [vmem:[#allocation8 + $0x18] sm:$0xff]  ;;  %v235_v54 = vld [vmem:[#allocation8 + $0x10] sm:$0xff]  ;;  %v282_v57 = vld [vmem:[#allocation8 + $0x188] sm:$0xff] }
  0x47   :  { %1036 = vmatprep.subr.mxu1 %v288_v33  ;;  %999 = vmatpush3.msra.mxu0 %v240_v34  ;;  %v268_v51 = vld [vmem:[#allocation8 + $0x118] sm:$0xff]  ;;  %v267_v55 = vld [vmem:[#allocation8 + $0x110] sm:$0xff]  ;;  %v234_v58 = vld [vmem:[#allocation8 + $0x8] sm:$0xff] }
  0x48   :  { %1037 = vmatpush3.msra.mxu1 %v272_v35  ;;  %1000 = vmatprep.subr.mxu0 %v255_v36  ;;  %v266_v59 = vld [vmem:[#allocation8 + $0x108] sm:$0xff]  ;;  %v249_v60 = vld [vmem:[#allocation8 + $0x80] sm:$0xff]  ;;  %v220_v1 = vld [vmem:[#allocation5 + $0x18] sm:$0xff] }
  0x49   :  { %1038 = vmatprep.subr.mxu1 %v287_v37  ;;  %1001 = vmatpush3.msra.mxu0 %v239_v38  ;;  %v281_v61 = vld [vmem:[#allocation8 + $0x180] sm:$0xff]  ;;  %v218_v63 = vld [vmem:[#allocation5 + $0x8] sm:$0xff]  ;;  %v219_v3 = vld [vmem:[#allocation5 + $0x10] sm:$0xff] }
  0x4a   :  { %1039 = vmatpush3.msra.mxu1 %v271_v39  ;;  %1002 = vmatprep.subr.mxu0 %v254_v40  ;;  %v233_v62 = vld [vmem:[#allocation8] sm:$0xff]  ;;  %v328_v4 = vld [vmem:[#allocation8 + $0x2f8] sm:$0xff]  ;;  %v327_v8 = vld [vmem:[#allocation8 + $0x2f0] sm:$0xff] }
  0x4b   :  { %1040 = vmatprep.subr.mxu1 %v286_v41  ;;  %1003 = vmatpush3.msra.mxu0 %v238_v42  ;;  %v265_v0 = vld [vmem:[#allocation8 + $0x100] sm:$0xff]  ;;  %v360_v5 = vld [vmem:[#allocation8 + $0x3f8] sm:$0xff]  ;;  %v359_v9 = vld [vmem:[#allocation8 + $0x3f0] sm:$0xff] }
  0x4c   :  { %1041 = vmatpush3.msra.mxu1 %v270_v43  ;;  %1004 = vmatprep.subr.mxu0 %v253_v44  ;;  %v217_v2 = vld [vmem:[#allocation5] sm:$0xff]  ;;  %v312_v6 = vld [vmem:[#allocation8 + $0x278] sm:$0xff]  ;;  %v311_v10 = vld [vmem:[#allocation8 + $0x270] sm:$0xff] }
  0x4d   :  { %1042 = vmatprep.subr.mxu1 %v285_v45  ;;  %1005 = vmatpush3.msra.mxu0 %v237_v46  ;;  %v344_v7 = vld [vmem:[#allocation8 + $0x378] sm:$0xff]  ;;  %v343_v11 = vld [vmem:[#allocation8 + $0x370] sm:$0xff]  ;;  %v326_v12 = vld [vmem:[#allocation8 + $0x2e8] sm:$0xff] }
  0x4e   :  { %1043 = vmatpush3.msra.mxu1 %v269_v47  ;;  %1006 = vmatprep.subr.mxu0 %v252_v48  ;;  %v358_v13 = vld [vmem:[#allocation8 + $0x3e8] sm:$0xff]  ;;  %v325_v16 = vld [vmem:[#allocation8 + $0x2e0] sm:$0xff]  ;;  %v324_v20 = vld [vmem:[#allocation8 + $0x2d8] sm:$0xff] }
  0x4f   :  { %1044 = vmatprep.subr.mxu1 %v284_v49  ;;  %1007 = vmatpush3.msra.mxu0 %v236_v50  ;;  %v310_v14 = vld [vmem:[#allocation8 + $0x268] sm:$0xff]  ;;  %v357_v17 = vld [vmem:[#allocation8 + $0x3e0] sm:$0xff]  ;;  %v356_v21 = vld [vmem:[#allocation8 + $0x3d8] sm:$0xff] }
  0x50   :  { %1045 = vmatpush3.msra.mxu1 %v268_v51  ;;  %1008 = vmatprep.subr.mxu0 %v251_v52  ;;  %v342_v15 = vld [vmem:[#allocation8 + $0x368] sm:$0xff]  ;;  %v309_v18 = vld [vmem:[#allocation8 + $0x260] sm:$0xff]  ;;  %v308_v22 = vld [vmem:[#allocation8 + $0x258] sm:$0xff] }
  0x51   :  { %1046 = vmatprep.subr.mxu1 %v283_v53  ;;  %1009 = vmatpush3.msra.mxu0 %v235_v54  ;;  %v341_v19 = vld [vmem:[#allocation8 + $0x360] sm:$0xff]  ;;  %v340_v23 = vld [vmem:[#allocation8 + $0x358] sm:$0xff]  ;;  %v323_v24 = vld [vmem:[#allocation8 + $0x2d0] sm:$0xff] }
  0x52   :  { %1047 = vmatpush3.msra.mxu1 %v267_v55  ;;  %1010 = vmatprep.subr.mxu0 %v250_v56  ;;  %v355_v25 = vld [vmem:[#allocation8 + $0x3d0] sm:$0xff]  ;;  %v322_v28 = vld [vmem:[#allocation8 + $0x2c8] sm:$0xff]  ;;  %v321_v32 = vld [vmem:[#allocation8 + $0x2c0] sm:$0xff] }
  0x53   :  { %1048 = vmatprep.subr.mxu1 %v282_v57  ;;  %1011 = vmatpush3.msra.mxu0 %v234_v58  ;;  %v307_v26 = vld [vmem:[#allocation8 + $0x250] sm:$0xff]  ;;  %v354_v29 = vld [vmem:[#allocation8 + $0x3c8] sm:$0xff]  ;;  %v353_v33 = vld [vmem:[#allocation8 + $0x3c0] sm:$0xff] }
  0x54   :  { %1049 = vmatpush3.msra.mxu1 %v266_v59  ;;  %1012 = vmatprep.subr.mxu0 %v249_v60  ;;  %v339_v27 = vld [vmem:[#allocation8 + $0x350] sm:$0xff]  ;;  %v306_v30 = vld [vmem:[#allocation8 + $0x248] sm:$0xff]  ;;  %v305_v34 = vld [vmem:[#allocation8 + $0x240] sm:$0xff] }
  0x55   :  { %1050 = vmatprep.subr.mxu1 %v281_v61  ;;  %1013 = vmatpush3.msra.mxu0 %v233_v62  ;;  %v338_v31 = vld [vmem:[#allocation8 + $0x348] sm:$0xff]  ;;  %v337_v35 = vld [vmem:[#allocation8 + $0x340] sm:$0xff]  ;;  %v320_v36 = vld [vmem:[#allocation8 + $0x2b8] sm:$0xff] }
  0x56   :  { %425 = vmatprep.mubr.f32.mxu0 %v218_v63  ;;  %1051 = vmatpush3.msra.mxu1 %v265_v0  ;;  %v352_v37 = vld [vmem:[#allocation8 + $0x3b8] sm:$0xff]  ;;  %v319_v40 = vld [vmem:[#allocation8 + $0x2b0] sm:$0xff]  ;;  %v318_v44 = vld [vmem:[#allocation8 + $0x2a8] sm:$0xff] }
  0x57   :  { %500 = vmatprep.mubr.f32.mxu1 %v220_v1  ;;  %426 = vmatmul.mubr.f32.vlgmr.msra.gmra.mxu0 %v217_v2  ;;  %v304_v38 = vld [vmem:[#allocation8 + $0x238] sm:$0xff]  ;;  %v351_v41 = vld [vmem:[#allocation8 + $0x3b0] sm:$0xff]  ;;  %v350_v45 = vld [vmem:[#allocation8 + $0x3a8] sm:$0xff] }
  0x58   :  { %501 = vmatmul.mubr.f32.vlgmr.msra.gmra.mxu1 %v219_v3  ;;  %1058 = vmatprep.subr.mxu0 %v328_v4  ;;  %v336_v39 = vld [vmem:[#allocation8 + $0x338] sm:$0xff]  ;;  %v303_v42 = vld [vmem:[#allocation8 + $0x230] sm:$0xff]  ;;  %v302_v46 = vld [vmem:[#allocation8 + $0x228] sm:$0xff] }
  0x59   :  { %1096 = vmatprep.subr.mxu1 %v360_v5  ;;  %1059 = vmatpush3.msra.mxu0 %v312_v6  ;;  %v335_v43 = vld [vmem:[#allocation8 + $0x330] sm:$0xff]  ;;  %v334_v47 = vld [vmem:[#allocation8 + $0x328] sm:$0xff]  ;;  %v317_v48 = vld [vmem:[#allocation8 + $0x2a0] sm:$0xff] }
  0x5a   :  { %1097 = vmatpush3.msra.mxu1 %v344_v7  ;;  %1060 = vmatprep.subr.mxu0 %v327_v8  ;;  %v349_v49 = vld [vmem:[#allocation8 + $0x3a0] sm:$0xff]  ;;  %v316_v52 = vld [vmem:[#allocation8 + $0x298] sm:$0xff]  ;;  %v226_v56 = vld [vmem:[#allocation5 + $0x48] sm:$0xff] }
  0x5b   :  { %1098 = vmatprep.subr.mxu1 %v359_v9  ;;  %1061 = vmatpush3.msra.mxu0 %v311_v10  ;;  %v301_v50 = vld [vmem:[#allocation8 + $0x220] sm:$0xff]  ;;  %v348_v53 = vld [vmem:[#allocation8 + $0x398] sm:$0xff]  ;;  %v315_v58 = vld [vmem:[#allocation8 + $0x290] sm:$0xff] }
  0x5c   :  { %1099 = vmatpush3.msra.mxu1 %v343_v11  ;;  %1062 = vmatprep.subr.mxu0 %v326_v12  ;;  %v333_v51 = vld [vmem:[#allocation8 + $0x320] sm:$0xff]  ;;  %v300_v54 = vld [vmem:[#allocation8 + $0x218] sm:$0xff]  ;;  %v347_v59 = vld [vmem:[#allocation8 + $0x390] sm:$0xff] }
  0x5d   :  { %1100 = vmatprep.subr.mxu1 %v358_v13  ;;  %1063 = vmatpush3.msra.mxu0 %v310_v14  ;;  %v332_v55 = vld [vmem:[#allocation8 + $0x318] sm:$0xff]  ;;  %v225_v60 = vld [vmem:[#allocation5 + $0x40] sm:$0xff]  ;;  %v227_v61 = vld [vmem:[#allocation5 + $0x50] sm:$0xff] }
  0x5e   :  { %1101 = vmatpush3.msra.mxu1 %v342_v15  ;;  %1064 = vmatprep.subr.mxu0 %v325_v16  ;;  %v228_v57 = vld [vmem:[#allocation5 + $0x58] sm:$0xff]  ;;  %v299_v62 = vld [vmem:[#allocation8 + $0x210] sm:$0xff]  ;;  %v314_v0 = vld [vmem:[#allocation8 + $0x288] sm:$0xff] }
  0x5f   :  { %1102 = vmatprep.subr.mxu1 %v357_v17  ;;  %1065 = vmatpush3.msra.mxu0 %v309_v18  ;;  %v331_v63 = vld [vmem:[#allocation8 + $0x310] sm:$0xff]  ;;  %v346_v1 = vld [vmem:[#allocation8 + $0x388] sm:$0xff]  ;;  %v313_v4 = vld [vmem:[#allocation8 + $0x280] sm:$0xff] }
  0x60   :  { %1103 = vmatpush3.msra.mxu1 %v341_v19  ;;  %1066 = vmatprep.subr.mxu0 %v324_v20  ;;  %v298_v2 = vld [vmem:[#allocation8 + $0x208] sm:$0xff]  ;;  %v345_v5 = vld [vmem:[#allocation8 + $0x380] sm:$0xff]  ;;  %v224_v10 = vld [vmem:[#allocation5 + $0x38] sm:$0xff] }
  0x61   :  { %1104 = vmatprep.subr.mxu1 %v356_v21  ;;  %1067 = vmatpush3.msra.mxu0 %v308_v22  ;;  %v330_v3 = vld [vmem:[#allocation8 + $0x308] sm:$0xff]  ;;  %v297_v6 = vld [vmem:[#allocation8 + $0x200] sm:$0xff]  ;;  %v120_v11 = vld [vmem:[#allocation7 + $0xf8] sm:$0xff] }
  0x62   :  { %1105 = vmatpush3.msra.mxu1 %v340_v23  ;;  %1068 = vmatprep.subr.mxu0 %v323_v24  ;;  %v222_v7 = vld [vmem:[#allocation5 + $0x28] sm:$0xff]  ;;  %v329_v8 = vld [vmem:[#allocation8 + $0x300] sm:$0xff]  ;;  %v152_v12 = vld [vmem:[#allocation7 + $0x1f8] sm:$0xff] }
  0x63   :  { %1106 = vmatprep.subr.mxu1 %v355_v25  ;;  %1069 = vmatpush3.msra.mxu0 %v307_v26  ;;  %v221_v9 = vld [vmem:[#allocation5 + $0x20] sm:$0xff]  ;;  %v223_v13 = vld [vmem:[#allocation5 + $0x30] sm:$0xff]  ;;  %v104_v14 = vld [vmem:[#allocation7 + $0x78] sm:$0xff] }
  0x64   :  { %1107 = vmatpush3.msra.mxu1 %v339_v27  ;;  %1070 = vmatprep.subr.mxu0 %v322_v28  ;;  %v136_v15 = vld [vmem:[#allocation7 + $0x178] sm:$0xff]  ;;  %v119_v16 = vld [vmem:[#allocation7 + $0xf0] sm:$0xff]  ;;  %v230_v18 = vld [vmem:[#allocation5 + $0x68] sm:$0xff] }
  0x65   :  { %1108 = vmatprep.subr.mxu1 %v354_v29  ;;  %1071 = vmatpush3.msra.mxu0 %v306_v30  ;;  %v151_v17 = vld [vmem:[#allocation7 + $0x1f0] sm:$0xff]  ;;  %v229_v21 = vld [vmem:[#allocation5 + $0x60] sm:$0xff]  ;;  %v118_v22 = vld [vmem:[#allocation7 + $0xe8] sm:$0xff] }
  0x66   :  { %1109 = vmatpush3.msra.mxu1 %v338_v31  ;;  %1072 = vmatprep.subr.mxu0 %v321_v32  ;;  %v103_v19 = vld [vmem:[#allocation7 + $0x70] sm:$0xff]  ;;  %v150_v23 = vld [vmem:[#allocation7 + $0x1e8] sm:$0xff]  ;;  %v232_v24 = vld [vmem:[#allocation5 + $0x78] sm:$0xff] }
  0x67   :  { %1110 = vmatprep.subr.mxu1 %v353_v33  ;;  %1073 = vmatpush3.msra.mxu0 %v305_v34  ;;  %v135_v20 = vld [vmem:[#allocation7 + $0x170] sm:$0xff]  ;;  %v102_v25 = vld [vmem:[#allocation7 + $0x68] sm:$0xff]  ;;  %v117_v27 = vld [vmem:[#allocation7 + $0xe0] sm:$0xff] }
  0x68   :  { %1111 = vmatpush3.msra.mxu1 %v337_v35  ;;  %1074 = vmatprep.subr.mxu0 %v320_v36  ;;  %v134_v26 = vld [vmem:[#allocation7 + $0x168] sm:$0xff]  ;;  %v231_v28 = vld [vmem:[#allocation5 + $0x70] sm:$0xff]  ;;  %v149_v29 = vld [vmem:[#allocation7 + $0x1e0] sm:$0xff] }
  0x69   :  { %1112 = vmatprep.subr.mxu1 %v352_v37  ;;  %1075 = vmatpush3.msra.mxu0 %v304_v38  ;;  %v101_v30 = vld [vmem:[#allocation7 + $0x60] sm:$0xff]  ;;  %v116_v32 = vld [vmem:[#allocation7 + $0xd8] sm:$0xff]  ;;  %v115_v36 = vld [vmem:[#allocation7 + $0xd0] sm:$0xff] }
  0x6a   :  { %1113 = vmatpush3.msra.mxu1 %v336_v39  ;;  %1076 = vmatprep.subr.mxu0 %v319_v40  ;;  %v133_v31 = vld [vmem:[#allocation7 + $0x160] sm:$0xff]  ;;  %v148_v33 = vld [vmem:[#allocation7 + $0x1d8] sm:$0xff]  ;;  %v147_v37 = vld [vmem:[#allocation7 + $0x1d0] sm:$0xff] }
  0x6b   :  { %1114 = vmatprep.subr.mxu1 %v351_v41  ;;  %1077 = vmatpush3.msra.mxu0 %v303_v42  ;;  %v100_v34 = vld [vmem:[#allocation7 + $0x58] sm:$0xff]  ;;  %v99_v38 = vld [vmem:[#allocation7 + $0x50] sm:$0xff]  ;;  %v114_v40 = vld [vmem:[#allocation7 + $0xc8] sm:$0xff] }
  0x6c   :  { %1115 = vmatpush3.msra.mxu1 %v335_v43  ;;  %1078 = vmatprep.subr.mxu0 %v318_v44  ;;  %v132_v35 = vld [vmem:[#allocation7 + $0x158] sm:$0xff]  ;;  %v131_v39 = vld [vmem:[#allocation7 + $0x150] sm:$0xff]  ;;  %v146_v41 = vld [vmem:[#allocation7 + $0x1c8] sm:$0xff] }
  0x6d   :  { %1116 = vmatprep.subr.mxu1 %v350_v45  ;;  %1079 = vmatpush3.msra.mxu0 %v302_v46  ;;  %v98_v42 = vld [vmem:[#allocation7 + $0x48] sm:$0xff]  ;;  %v113_v44 = vld [vmem:[#allocation7 + $0xc0] sm:$0xff] }
  0x6e   :  { %1117 = vmatpush3.msra.mxu1 %v334_v47  ;;  %1080 = vmatprep.subr.mxu0 %v317_v48  ;;  %v130_v43 = vld [vmem:[#allocation7 + $0x148] sm:$0xff]  ;;  %v145_v45 = vld [vmem:[#allocation7 + $0x1c0] sm:$0xff]  ;;  %v112_v48 = vld [vmem:[#allocation7 + $0xb8] sm:$0xff] }
  0x6f   :  { %1118 = vmatprep.subr.mxu1 %v349_v49  ;;  %1081 = vmatpush3.msra.mxu0 %v301_v50  ;;  %v97_v46 = vld [vmem:[#allocation7 + $0x40] sm:$0xff]  ;;  %v144_v49 = vld [vmem:[#allocation7 + $0x1b8] sm:$0xff] }
  0x70   :  { %1119 = vmatpush3.msra.mxu1 %v333_v51  ;;  %1082 = vmatprep.subr.mxu0 %v316_v52  ;;  %v129_v47 = vld [vmem:[#allocation7 + $0x140] sm:$0xff]  ;;  %v96_v50 = vld [vmem:[#allocation7 + $0x38] sm:$0xff]  ;;  %v111_v52 = vld [vmem:[#allocation7 + $0xb0] sm:$0xff] }
  0x71   :  { %1120 = vmatprep.subr.mxu1 %v348_v53  ;;  %1083 = vmatpush3.msra.mxu0 %v300_v54  ;;  %v128_v51 = vld [vmem:[#allocation7 + $0x138] sm:$0xff]  ;;  %v143_v53 = vld [vmem:[#allocation7 + $0x1b0] sm:$0xff] }
  0x72   :  { %1121 = vmatpush3.msra.mxu1 %v332_v55  ;;  %430 = vmatprep.mubr.f32.mxu0 %v226_v56  ;;  %v95_v54 = vld [vmem:[#allocation7 + $0x30] sm:$0xff]  ;;  %v110_v56 = vld [vmem:[#allocation7 + $0xa8] sm:$0xff] }
  0x73   :  { %505 = vmatprep.mubr.f32.mxu1 %v228_v57  ;;  %1084 = vmatprep.subr.mxu0 %v315_v58  ;;  %v127_v55 = vld [vmem:[#allocation7 + $0x130] sm:$0xff]  ;;  %v142_v57 = vld [vmem:[#allocation7 + $0x1a8] sm:$0xff] }
  0x74   :  { %1122 = vmatprep.subr.mxu1 %v347_v59  ;;  %431 = vmatmul.mubr.f32.gmra.mxu0 %v225_v60  ;;  %v94_v58 = vld [vmem:[#allocation7 + $0x28] sm:$0xff]  ;;  %v109_v60 = vld [vmem:[#allocation7 + $0xa0] sm:$0xff] }
  0x75   :  { %506 = vmatmul.mubr.f32.gmra.mxu1 %v227_v61  ;;  %1085 = vmatpush3.msra.mxu0 %v299_v62  ;;  %v126_v59 = vld [vmem:[#allocation7 + $0x128] sm:$0xff]  ;;  %v141_v61 = vld [vmem:[#allocation7 + $0x1a0] sm:$0xff] }
  0x76   :  { %1123 = vmatpush3.msra.mxu1 %v331_v63  ;;  %1086 = vmatprep.subr.mxu0 %v314_v0  ;;  %v93_v62 = vld [vmem:[#allocation7 + $0x20] sm:$0xff]  ;;  %v108_v0 = vld [vmem:[#allocation7 + $0x98] sm:$0xff] }
  0x77   :  { %1124 = vmatprep.subr.mxu1 %v346_v1  ;;  %1087 = vmatpush3.msra.mxu0 %v298_v2  ;;  %v125_v63 = vld [vmem:[#allocation7 + $0x120] sm:$0xff]  ;;  %v140_v1 = vld [vmem:[#allocation7 + $0x198] sm:$0xff] }
  0x78   :  { %1125 = vmatpush3.msra.mxu1 %v330_v3  ;;  %1088 = vmatprep.subr.mxu0 %v313_v4  ;;  %v92_v2 = vld [vmem:[#allocation7 + $0x18] sm:$0xff]  ;;  %v107_v4 = vld [vmem:[#allocation7 + $0x90] sm:$0xff] }
  0x79   :  { %1126 = vmatprep.subr.mxu1 %v345_v5  ;;  %1089 = vmatpush3.msra.mxu0 %v297_v6  ;;  %v124_v3 = vld [vmem:[#allocation7 + $0x118] sm:$0xff]  ;;  %v139_v5 = vld [vmem:[#allocation7 + $0x190] sm:$0xff] }
  0x7a   :  { %575 = vmatprep.mubr.f32.mxu0 %v222_v7  ;;  %1127 = vmatpush3.msra.mxu1 %v329_v8  ;;  %v91_v6 = vld [vmem:[#allocation7 + $0x10] sm:$0xff]  ;;  %v106_v8 = vld [vmem:[#allocation7 + $0x88] sm:$0xff] }
  0x7b   :  { %576 = vmatmul.mubr.f32.vlgmr.msra.gmra.mxu0 %v221_v9  ;;  %650 = vmatprep.mubr.f32.mxu1 %v224_v10  ;;  %v123_v7 = vld [vmem:[#allocation7 + $0x110] sm:$0xff]  ;;  %v138_v9 = vld [vmem:[#allocation7 + $0x188] sm:$0xff] }
  0x7c   :  { %1134 = vmatprep.subr.mxu0 %v120_v11  ;;  %1172 = vmatprep.subr.mxu1 %v152_v12  ;;  %v90_v10 = vld [vmem:[#allocation7 + $0x8] sm:$0xff]  ;;  %v105_v12 = vld [vmem:[#allocation7 + $0x80] sm:$0xff] }
  0x7d   :  { %651 = vmatmul.mubr.f32.vlgmr.msra.gmra.mxu1 %v223_v13  ;;  %1135 = vmatpush3.msra.mxu0 %v104_v14  ;;  %v122_v11 = vld [vmem:[#allocation7 + $0x108] sm:$0xff]  ;;  %v137_v13 = vld [vmem:[#allocation7 + $0x180] sm:$0xff] }
  0x7e   :  { %1173 = vmatpush3.msra.mxu1 %v136_v15  ;;  %1136 = vmatprep.subr.mxu0 %v119_v16  ;;  %v89_v14 = vld [vmem:[#allocation7] sm:$0xff]  ;;  %v74_v15 = vld [vmem:[#allocation2 + $0x8] sm:$0xff] }
  0x7f   :  { %1174 = vmatprep.subr.mxu1 %v151_v17  ;;  %580 = vmatprep.mubr.f32.mxu0 %v230_v18  ;;  %v121_v16 = vld [vmem:[#allocation7 + $0x100] sm:$0xff]  ;;  %v76_v18 = vld [vmem:[#allocation2 + $0x18] sm:$0xff] }
  0x80   :  { %1137 = vmatpush3.msra.mxu0 %v103_v19  ;;  %1175 = vmatpush3.msra.mxu1 %v135_v20  ;;  %v73_v17 = vld [vmem:[#allocation2] sm:$0xff]  ;;  %v184_v19 = vld [vmem:[#allocation7 + $0x2f8] sm:$0xff] }
  0x81   :  { %581 = vmatmul.mubr.f32.gmra.mxu0 %v229_v21  ;;  %1138 = vmatprep.subr.mxu0 %v118_v22  ;;  %v216_v20 = vld [vmem:[#allocation7 + $0x3f8] sm:$0xff]  ;;  %v75_v21 = vld [vmem:[#allocation2 + $0x10] sm:$0xff] }
  0x82   :  { %1176 = vmatprep.subr.mxu1 %v150_v23  ;;  %655 = vmatprep.mubr.f32.mxu1 %v232_v24  ;;  %v168_v22 = vld [vmem:[#allocation7 + $0x278] sm:$0xff]  ;;  %v183_v24 = vld [vmem:[#allocation7 + $0x2f0] sm:$0xff] }
  0x83   :  { %1139 = vmatpush3.msra.mxu0 %v102_v25  ;;  %1177 = vmatpush3.msra.mxu1 %v134_v26  ;;  %v200_v23 = vld [vmem:[#allocation7 + $0x378] sm:$0xff]  ;;  %v215_v25 = vld [vmem:[#allocation7 + $0x3f0] sm:$0xff]  ;;  %v82_v26 = vld [vmem:[#allocation2 + $0x48] sm:$0xff] }
  0x84   :  { %1140 = vmatprep.subr.mxu0 %v117_v27  ;;  %656 = vmatmul.mubr.f32.gmra.mxu1 %v231_v28  ;;  %v167_v27 = vld [vmem:[#allocation7 + $0x270] sm:$0xff] }
  0x85   :  { %1178 = vmatprep.subr.mxu1 %v149_v29  ;;  %1141 = vmatpush3.msra.mxu0 %v101_v30  ;;  %v199_v28 = vld [vmem:[#allocation7 + $0x370] sm:$0xff]  ;;  %v81_v29 = vld [vmem:[#allocation2 + $0x40] sm:$0xff]  ;;  %v182_v30 = vld [vmem:[#allocation7 + $0x2e8] sm:$0xff] }
  0x86   :  { %1179 = vmatpush3.msra.mxu1 %v133_v31  ;;  %1142 = vmatprep.subr.mxu0 %v116_v32  ;;  %v214_v31 = vld [vmem:[#allocation7 + $0x3e8] sm:$0xff]  ;;  %v84_v32 = vld [vmem:[#allocation2 + $0x58] sm:$0xff] }
  0x87   :  { %1180 = vmatprep.subr.mxu1 %v148_v33  ;;  %1143 = vmatpush3.msra.mxu0 %v100_v34  ;;  %v166_v33 = vld [vmem:[#allocation7 + $0x268] sm:$0xff] }
  0x88   :  { %1181 = vmatpush3.msra.mxu1 %v132_v35  ;;  %1144 = vmatprep.subr.mxu0 %v115_v36  ;;  %v198_v34 = vld [vmem:[#allocation7 + $0x368] sm:$0xff]  ;;  %v181_v35 = vld [vmem:[#allocation7 + $0x2e0] sm:$0xff]  ;;  %v83_v36 = vld [vmem:[#allocation2 + $0x50] sm:$0xff] }
  0x89   :  { %1182 = vmatprep.subr.mxu1 %v147_v37  ;;  %1145 = vmatpush3.msra.mxu0 %v99_v38  ;;  %v213_v37 = vld [vmem:[#allocation7 + $0x3e0] sm:$0xff] }
  0x8a   :  { %1183 = vmatpush3.msra.mxu1 %v131_v39  ;;  %1146 = vmatprep.subr.mxu0 %v114_v40  ;;  %v165_v38 = vld [vmem:[#allocation7 + $0x260] sm:$0xff]  ;;  %v180_v40 = vld [vmem:[#allocation7 + $0x2d8] sm:$0xff] }
  0x8b   :  { %1184 = vmatprep.subr.mxu1 %v146_v41  ;;  %1147 = vmatpush3.msra.mxu0 %v98_v42  ;;  %v197_v39 = vld [vmem:[#allocation7 + $0x360] sm:$0xff]  ;;  %v212_v41 = vld [vmem:[#allocation7 + $0x3d8] sm:$0xff] }
  0x8c   :  { %1185 = vmatpush3.msra.mxu1 %v130_v43  ;;  %1148 = vmatprep.subr.mxu0 %v113_v44  ;;  %v164_v42 = vld [vmem:[#allocation7 + $0x258] sm:$0xff]  ;;  %v179_v44 = vld [vmem:[#allocation7 + $0x2d0] sm:$0xff] }
  0x8d   :  { %1186 = vmatprep.subr.mxu1 %v145_v45  ;;  %1149 = vmatpush3.msra.mxu0 %v97_v46  ;;  %v196_v43 = vld [vmem:[#allocation7 + $0x358] sm:$0xff]  ;;  %v211_v45 = vld [vmem:[#allocation7 + $0x3d0] sm:$0xff] }
  0x8e   :  { %1187 = vmatpush3.msra.mxu1 %v129_v47  ;;  %1150 = vmatprep.subr.mxu0 %v112_v48  ;;  %v163_v46 = vld [vmem:[#allocation7 + $0x250] sm:$0xff]  ;;  %v178_v48 = vld [vmem:[#allocation7 + $0x2c8] sm:$0xff] }
  0x8f   :  { %1188 = vmatprep.subr.mxu1 %v144_v49  ;;  %1151 = vmatpush3.msra.mxu0 %v96_v50  ;;  %v195_v47 = vld [vmem:[#allocation7 + $0x350] sm:$0xff]  ;;  %v210_v49 = vld [vmem:[#allocation7 + $0x3c8] sm:$0xff] }
  0x90   :  { %1189 = vmatpush3.msra.mxu1 %v128_v51  ;;  %1152 = vmatprep.subr.mxu0 %v111_v52  ;;  %v162_v50 = vld [vmem:[#allocation7 + $0x248] sm:$0xff]  ;;  %v177_v52 = vld [vmem:[#allocation7 + $0x2c0] sm:$0xff] }
  0x91   :  { %1190 = vmatprep.subr.mxu1 %v143_v53  ;;  %1153 = vmatpush3.msra.mxu0 %v95_v54  ;;  %v194_v51 = vld [vmem:[#allocation7 + $0x348] sm:$0xff]  ;;  %v209_v53 = vld [vmem:[#allocation7 + $0x3c0] sm:$0xff] }
  0x92   :  { %1191 = vmatpush3.msra.mxu1 %v127_v55  ;;  %1154 = vmatprep.subr.mxu0 %v110_v56  ;;  %v161_v54 = vld [vmem:[#allocation7 + $0x240] sm:$0xff]  ;;  %v176_v56 = vld [vmem:[#allocation7 + $0x2b8] sm:$0xff] }
  0x93   :  { %1192 = vmatprep.subr.mxu1 %v142_v57  ;;  %1155 = vmatpush3.msra.mxu0 %v94_v58  ;;  %v193_v55 = vld [vmem:[#allocation7 + $0x340] sm:$0xff]  ;;  %v208_v57 = vld [vmem:[#allocation7 + $0x3b8] sm:$0xff] }
  0x94   :  { %1193 = vmatpush3.msra.mxu1 %v126_v59  ;;  %1156 = vmatprep.subr.mxu0 %v109_v60  ;;  %v160_v58 = vld [vmem:[#allocation7 + $0x238] sm:$0xff]  ;;  %v175_v60 = vld [vmem:[#allocation7 + $0x2b0] sm:$0xff] }
  0x95   :  { %1194 = vmatprep.subr.mxu1 %v141_v61  ;;  %1157 = vmatpush3.msra.mxu0 %v93_v62  ;;  %v192_v59 = vld [vmem:[#allocation7 + $0x338] sm:$0xff]  ;;  %v207_v61 = vld [vmem:[#allocation7 + $0x3b0] sm:$0xff] }
  0x96   :  { %1195 = vmatpush3.msra.mxu1 %v125_v63  ;;  %1158 = vmatprep.subr.mxu0 %v108_v0  ;;  %v159_v62 = vld [vmem:[#allocation7 + $0x230] sm:$0xff]  ;;  %v174_v0 = vld [vmem:[#allocation7 + $0x2a8] sm:$0xff] }
  0x97   :  { %1196 = vmatprep.subr.mxu1 %v140_v1  ;;  %1159 = vmatpush3.msra.mxu0 %v92_v2  ;;  %v191_v63 = vld [vmem:[#allocation7 + $0x330] sm:$0xff]  ;;  %v206_v1 = vld [vmem:[#allocation7 + $0x3a8] sm:$0xff] }
  0x98   :  { %1197 = vmatpush3.msra.mxu1 %v124_v3  ;;  %1160 = vmatprep.subr.mxu0 %v107_v4  ;;  %v158_v2 = vld [vmem:[#allocation7 + $0x228] sm:$0xff]  ;;  %v173_v4 = vld [vmem:[#allocation7 + $0x2a0] sm:$0xff] }
  0x99   :  { %1198 = vmatprep.subr.mxu1 %v139_v5  ;;  %1161 = vmatpush3.msra.mxu0 %v91_v6  ;;  %v190_v3 = vld [vmem:[#allocation7 + $0x328] sm:$0xff]  ;;  %v205_v5 = vld [vmem:[#allocation7 + $0x3a0] sm:$0xff] }
  0x9a   :  { %1199 = vmatpush3.msra.mxu1 %v123_v7  ;;  %1162 = vmatprep.subr.mxu0 %v106_v8  ;;  %v157_v6 = vld [vmem:[#allocation7 + $0x220] sm:$0xff]  ;;  %v172_v8 = vld [vmem:[#allocation7 + $0x298] sm:$0xff] }
  0x9b   :  { %1200 = vmatprep.subr.mxu1 %v138_v9  ;;  %1163 = vmatpush3.msra.mxu0 %v90_v10  ;;  %v189_v7 = vld [vmem:[#allocation7 + $0x320] sm:$0xff]  ;;  %v204_v9 = vld [vmem:[#allocation7 + $0x398] sm:$0xff] }
  0x9c   :  { %1201 = vmatpush3.msra.mxu1 %v122_v11  ;;  %1164 = vmatprep.subr.mxu0 %v105_v12  ;;  %v156_v10 = vld [vmem:[#allocation7 + $0x218] sm:$0xff]  ;;  %v171_v12 = vld [vmem:[#allocation7 + $0x290] sm:$0xff] }
  0x9d   :  { %1202 = vmatprep.subr.mxu1 %v137_v13  ;;  %1165 = vmatpush3.msra.mxu0 %v89_v14  ;;  %v188_v11 = vld [vmem:[#allocation7 + $0x318] sm:$0xff]  ;;  %v203_v13 = vld [vmem:[#allocation7 + $0x390] sm:$0xff] }
  0x9e   :  { %725 = vmatprep.mubr.f32.mxu0 %v74_v15  ;;  %1203 = vmatpush3.msra.mxu1 %v121_v16  ;;  %v155_v14 = vld [vmem:[#allocation7 + $0x210] sm:$0xff]  ;;  %v170_v16 = vld [vmem:[#allocation7 + $0x288] sm:$0xff] }
  0x9f   :  { %726 = vmatmul.mubr.f32.vlgmr.msra.gmra.mxu0 %v73_v17  ;;  %800 = vmatprep.mubr.f32.mxu1 %v76_v18  ;;  %v187_v15 = vld [vmem:[#allocation7 + $0x310] sm:$0xff]  ;;  %v202_v17 = vld [vmem:[#allocation7 + $0x388] sm:$0xff] }
  0xa0   :  { %1210 = vmatprep.subr.mxu0 %v184_v19  ;;  %1248 = vmatprep.subr.mxu1 %v216_v20  ;;  %v154_v18 = vld [vmem:[#allocation7 + $0x208] sm:$0xff]  ;;  %v169_v20 = vld [vmem:[#allocation7 + $0x280] sm:$0xff] }
  0xa1   :  { %801 = vmatmul.mubr.f32.vlgmr.msra.gmra.mxu1 %v75_v21  ;;  %1211 = vmatpush3.msra.mxu0 %v168_v22  ;;  %v186_v19 = vld [vmem:[#allocation7 + $0x308] sm:$0xff]  ;;  %v201_v21 = vld [vmem:[#allocation7 + $0x380] sm:$0xff] }
  0xa2   :  { %1249 = vmatpush3.msra.mxu1 %v200_v23  ;;  %1212 = vmatprep.subr.mxu0 %v183_v24  ;;  %v153_v22 = vld [vmem:[#allocation7 + $0x200] sm:$0xff]  ;;  %v78_v23 = vld [vmem:[#allocation2 + $0x28] sm:$0xff] }
  0xa3   :  { %1250 = vmatprep.subr.mxu1 %v215_v25  ;;  %730 = vmatprep.mubr.f32.mxu0 %v82_v26  ;;  %v185_v24 = vld [vmem:[#allocation7 + $0x300] sm:$0xff]  ;;  %v80_v25 = vld [vmem:[#allocation2 + $0x38] sm:$0xff] }
  0xa4   :  { %1213 = vmatpush3.msra.mxu0 %v167_v27  ;;  %1251 = vmatpush3.msra.mxu1 %v199_v28  ;;  %v77_v26 = vld [vmem:[#allocation2 + $0x20] sm:$0xff]  ;;  %v79_v27 = vld [vmem:[#allocation2 + $0x30] sm:$0xff]  ;;  %v86_v28 = vld [vmem:[#allocation2 + $0x68] sm:$0xff] }
  0xa5   :  { %731 = vmatmul.mubr.f32.gmra.mxu0 %v81_v29  ;;  %1214 = vmatprep.subr.mxu0 %v182_v30  ;;  %v88_v29 = vld [vmem:[#allocation2 + $0x78] sm:$0xff]  ;;  %v85_v30 = vld [vmem:[#allocation2 + $0x60] sm:$0xff] }
  0xa6   :  { %1252 = vmatprep.subr.mxu1 %v214_v31  ;;  %805 = vmatprep.mubr.f32.mxu1 %v84_v32  ;;  %v87_v31 = vld [vmem:[#allocation2 + $0x70] sm:$0xff] }
  0xa7   :  { %1215 = vmatpush3.msra.mxu0 %v166_v33  ;;  %1253 = vmatpush3.msra.mxu1 %v198_v34 }
  0xa8   :  { %1216 = vmatprep.subr.mxu0 %v181_v35  ;;  %806 = vmatmul.mubr.f32.gmra.mxu1 %v83_v36 }
  0xa9   :  { %1254 = vmatprep.subr.mxu1 %v213_v37  ;;  %1217 = vmatpush3.msra.mxu0 %v165_v38 }
  0xaa   :  { %1255 = vmatpush3.msra.mxu1 %v197_v39  ;;  %1218 = vmatprep.subr.mxu0 %v180_v40 }
  0xab   :  { %1256 = vmatprep.subr.mxu1 %v212_v41  ;;  %1219 = vmatpush3.msra.mxu0 %v164_v42 }
  0xac   :  { %1257 = vmatpush3.msra.mxu1 %v196_v43  ;;  %1220 = vmatprep.subr.mxu0 %v179_v44 }
  0xad   :  { %1258 = vmatprep.subr.mxu1 %v211_v45  ;;  %1221 = vmatpush3.msra.mxu0 %v163_v46 }
  0xae   :  { %1259 = vmatpush3.msra.mxu1 %v195_v47  ;;  %1222 = vmatprep.subr.mxu0 %v178_v48 }
  0xaf   :  { %1260 = vmatprep.subr.mxu1 %v210_v49  ;;  %1223 = vmatpush3.msra.mxu0 %v162_v50 }
  0xb0   :  { %1261 = vmatpush3.msra.mxu1 %v194_v51  ;;  %1224 = vmatprep.subr.mxu0 %v177_v52 }
  0xb1   :  { %1262 = vmatprep.subr.mxu1 %v209_v53  ;;  %1225 = vmatpush3.msra.mxu0 %v161_v54 }
  0xb2   :  { %1263 = vmatpush3.msra.mxu1 %v193_v55  ;;  %1226 = vmatprep.subr.mxu0 %v176_v56 }
  0xb3   :  { %1264 = vmatprep.subr.mxu1 %v208_v57  ;;  %1227 = vmatpush3.msra.mxu0 %v160_v58 }
  0xb4   :  { %1265 = vmatpush3.msra.mxu1 %v192_v59  ;;  %1228 = vmatprep.subr.mxu0 %v175_v60 }
  0xb5   :  { %1266 = vmatprep.subr.mxu1 %v207_v61  ;;  %1229 = vmatpush3.msra.mxu0 %v159_v62 }
  0xb6   :  { %1267 = vmatpush3.msra.mxu1 %v191_v63  ;;  %1230 = vmatprep.subr.mxu0 %v174_v0 }
  0xb7   :  { %1268 = vmatprep.subr.mxu1 %v206_v1  ;;  %1231 = vmatpush3.msra.mxu0 %v158_v2 }
  0xb8   :  { %1269 = vmatpush3.msra.mxu1 %v190_v3  ;;  %1232 = vmatprep.subr.mxu0 %v173_v4 }
  0xb9   :  { %1270 = vmatprep.subr.mxu1 %v205_v5  ;;  %1233 = vmatpush3.msra.mxu0 %v157_v6 }
  0xba   :  { %1271 = vmatpush3.msra.mxu1 %v189_v7  ;;  %1234 = vmatprep.subr.mxu0 %v172_v8 }
  0xbb   :  { %1272 = vmatprep.subr.mxu1 %v204_v9  ;;  %1235 = vmatpush3.msra.mxu0 %v156_v10 }
  0xbc   :  { %1273 = vmatpush3.msra.mxu1 %v188_v11  ;;  %1236 = vmatprep.subr.mxu0 %v171_v12 }
  0xbd   :  { %1274 = vmatprep.subr.mxu1 %v203_v13  ;;  %1237 = vmatpush3.msra.mxu0 %v155_v14 }
  0xbe   :  { %1275 = vmatpush3.msra.mxu1 %v187_v15  ;;  %1238 = vmatprep.subr.mxu0 %v170_v16 }
  0xbf   :  { %1276 = vmatprep.subr.mxu1 %v202_v17  ;;  %1239 = vmatpush3.msra.mxu0 %v154_v18 }
  0xc0   :  { %1277 = vmatpush3.msra.mxu1 %v186_v19  ;;  %1240 = vmatprep.subr.mxu0 %v169_v20 }
  0xc1   :  { %1278 = vmatprep.subr.mxu1 %v201_v21  ;;  %1241 = vmatpush3.msra.mxu0 %v153_v22 }
  0xc2   :  { %875 = vmatprep.mubr.f32.mxu0 %v78_v23  ;;  %1279 = vmatpush3.msra.mxu1 %v185_v24 }
  0xc3   :  { %950 = vmatprep.mubr.f32.mxu1 %v80_v25  ;;  %876 = vmatmul.mubr.f32.vlgmr.msra.gmra.mxu0 %v77_v26 }
  0xc4   :  { %951 = vmatmul.mubr.f32.vlgmr.msra.gmra.mxu1 %v79_v27  ;;  %880 = vmatprep.mubr.f32.mxu0 %v86_v28 }
  0xc5   :  { %955 = vmatprep.mubr.f32.mxu1 %v88_v29 }
  0xc7   :  { %881 = vmatmul.mubr.f32.gmra.mxu0 %v85_v30 }
  0xc8   :  { %956 = vmatmul.mubr.f32.gmra.mxu1 %v87_v31 }
 0x117   :  { %v1014_v32 = vpop.f32.mrf.mxu0 }
 0x118   :  { %v1052_v33 = vpop.f32.mrf.mxu1 }
 0x119   :  { %v1015_v34 = vpop.f32.mrf.mxu0 }
 0x11a   :  { %v1053_v36 = vpop.f32.mrf.mxu1  ;;  %v1016_v50 = vadd.f32 %v1015_v34, %v1014_v32 }
 0x11b   :  { %v1054_v51 = vadd.f32 %v1053_v36, %v1052_v33 }
 0x11d   :  { %v503_v55 = vadd.f32 %v1054_v51, %v1016_v50 }
 0x134   :  { %v1017_v35 = vpop.f32.mrf.mxu0 }
 0x135   :  { %v1055_v37 = vpop.f32.mrf.mxu1 }
 0x136   :  { %v1018_v38 = vpop.f32.mrf.mxu0 }
 0x137   :  { %v1056_v39 = vpop.f32.mrf.mxu1  ;;  %v1019_v56 = vadd.f32 %v1018_v38, %v1017_v35 }
 0x138   :  { %v1057_v57 = vadd.f32 %v1056_v39, %v1055_v37 }
 0x13a   :  { %v508_v63 = vadd.f32 %v1057_v57, %v1019_v56 }
 0x13b   :  { %v1090_v40 = vpop.f32.mrf.mxu0 }
 0x13d   :  { %v1128_v41 = vpop.f32.mrf.mxu1  ;;  %v1091_v42 = vpop.f32.mrf.mxu0 }
 0x13e   :  { %v1092_v53 = vadd.f32 %v1091_v42, %v1090_v40 }
 0x13f   :  { %v1129_v43 = vpop.f32.mrf.mxu1 }
 0x140   :  { %v578_v59 = vadd.f32 %v1092_v53, %v503_v55  ;;  %v1130_v60 = vadd.f32 %v1129_v43, %v1128_v41 }
 0x141   :  { %v1093_v44 = vpop.f32.mrf.mxu0 }
 0x142   :  { %v653_v2 = vadd.f32 %v1130_v60, %v578_v59 }
 0x143   :  { %v1094_v46 = vpop.f32.mrf.mxu0 }
 0x144   :  { %v1131_v45 = vpop.f32.mrf.mxu1  ;;  %v1095_v61 = vadd.f32 %v1094_v46, %v1093_v44 }
 0x146   :  { %v1132_v47 = vpop.f32.mrf.mxu1  ;;  %v583_v3 = vadd.f32 %v1095_v61, %v508_v63 }
 0x147   :  { %v1133_v4 = vadd.f32 %v1132_v47, %v1131_v45 }
 0x149   :  { %v658_v11 = vadd.f32 %v1133_v4, %v583_v3 }
 0x15f   :  { %v1166_v48 = vpop.f32.mrf.mxu0 }
 0x161   :  { %v1204_v49 = vpop.f32.mrf.mxu1  ;;  %v1167_v52 = vpop.f32.mrf.mxu0 }
 0x162   :  { %v1168_v0 = vadd.f32 %v1167_v52, %v1166_v48 }
 0x163   :  { %v1205_v54 = vpop.f32.mrf.mxu1 }
 0x164   :  { %v728_v6 = vadd.f32 %v1168_v0, %v653_v2  ;;  %v1206_v7 = vadd.f32 %v1205_v54, %v1204_v49 }
 0x165   :  { %v1169_v58 = vpop.f32.mrf.mxu0 }
 0x166   :  { %v803_v14 = vadd.f32 %v1206_v7, %v728_v6 }
 0x167   :  { %v1170_v1 = vpop.f32.mrf.mxu0 }
 0x168   :  { %v1207_v62 = vpop.f32.mrf.mxu1  ;;  %v1171_v8 = vadd.f32 %v1170_v1, %v1169_v58 }
 0x16a   :  { %v1208_v5 = vpop.f32.mrf.mxu1  ;;  %v733_v15 = vadd.f32 %v1171_v8, %v658_v11 }
 0x16b   :  { %v1209_v16 = vadd.f32 %v1208_v5, %v1207_v62 }
 0x16d   :  { %v808_v24 = vadd.f32 %v1209_v16, %v733_v15 }
 0x183   :  { %v1242_v9 = vpop.f32.mrf.mxu0 }
 0x184   :  { %v1280_v10 = vpop.f32.mrf.mxu1 }
 0x185   :  { %v1243_v12 = vpop.f32.mrf.mxu0 }
 0x186   :  { %v1281_v13 = vpop.f32.mrf.mxu1  ;;  %v1244_v17 = vadd.f32 %v1243_v12, %v1242_v9 }
 0x187   :  { %v1245_v18 = vpop.f32.mrf.mxu0  ;;  %v1282_v21 = vadd.f32 %v1281_v13, %v1280_v10 }
 0x188   :  { %v1283_v19 = vpop.f32.mrf.mxu1  ;;  %v878_v20 = vadd.f32 %v1244_v17, %v803_v14 }
 0x189   :  { %v1246_v22 = vpop.f32.mrf.mxu0 }
 0x18a   :  { %v1284_v23 = vpop.f32.mrf.mxu1  ;;  %v953_v25 = vadd.f32 %v1282_v21, %v878_v20  ;;  %v1247_v26 = vadd.f32 %v1246_v22, %v1245_v18 }
 0x18b   :  { %v1285_v28 = vadd.f32 %v1284_v23, %v1283_v19 }
 0x18c   :  { %961 = vst [vmem:[#allocation10] sm:$0xff] %v953_v25  ;;  %v883_v27 = vadd.f32 %v1247_v26, %v808_v24 }
 0x18e   :  { %v958_v29 = vadd.f32 %v1285_v28, %v883_v27 }
 0x190   :  { %962 = vst [vmem:[#allocation10 + $0x8] sm:$0xff] %v958_v29 }
 0x191   :  { %1386 = shalt.err (!%p1383_p10)
}
 0x192   :  { %974 = dma.vmem_to_hbm [thread:$0]  %s969_s3, 256, %s1465_s4, [#allocation4], %s1408_s1, %s1408_s1, %s1409_s30  }
 0x193   :  { %1401 = dma.done.wait [#allocation4], 256  }
 0x194   :  { %1402 = vsyncadd [#allocation4], 4294967040 }
 0x195   :  { %978 = vsyncpa [#allocation3], 1 }
 0x196   :  { %979 = vsyncpa [#allocation6], 1 }
 0x197   :  { %980 = vsyncpa [#allocation9], 1 }
 0x198   :  { %981 = vsyncpa [#allocation4], 1 }

</bundles_post_ra>
